<compile_context>
chip_gen: v7x
topology: tpu7x:2x2x1
jax: 0.10.0
libtpu: 0.0.40
codegen_flags: <defaults>
</compile_context>

<pallas_src>
import jax
import jax.numpy as jnp
from jax.experimental import pallas as pl
from jax.experimental.pallas import tpu as pltpu


def _round_up(x, m):
    return (x + m - 1) // m * m


def _choose_tile(B, block_b):
    """Pick the batch tile: biggest that fits, >=2 steps when batch is large."""
    if B <= block_b:
        half = B // 2
        # 2 parallel steps feed both TensorCores on v7x; on single-TC chips
        # (v5e/v6e) this costs one extra ~0.35us step, which is negligible.
        if B >= 512 and B % 2 == 0 and half % 8 == 0:
            return half
        return B                       # single full-batch step, no padding
    return block_b                     # large batch: cap by VMEM-friendly tile


def _mlp_kernel(x_ref, w1_ref, b1_ref, w2_ref, b2_ref, o_ref):
    # in-kernel bf16 cast of activations (free VPU work, halves nothing in HBM
    # but avoids a wrapper-side astype pass over x)
    x = x_ref[...].astype(jnp.bfloat16)
    # hidden linear: bf16 operands on the MXU, f32 accumulate
    h = jnp.dot(x, w1_ref[...], preferred_element_type=jnp.float32)
    # bias + ReLU in f32 (v5e VPU has no bf16 path)
    h = jnp.maximum(h + b1_ref[...], 0.0)
    # output linear: cast only the MXU operand to bf16, keep f32 accumulation
    z = jnp.dot(h.astype(jnp.bfloat16), w2_ref[...],
                preferred_element_type=jnp.float32)
    z = z + b2_ref[...]
    # sigmoid = 1 / (1 + exp(-z)); exp + approximate reciprocal both on EUP
    o_ref[...] = pl.reciprocal(1.0 + jnp.exp(-z), approx=True).astype(o_ref.dtype)


def player_net_forward(x, w1, b1, w2, b2, *, block_b=4096, out_dtype=jnp.float32):
    """Forward pass of PlayerNet.Net.

    x : (B, input_count) float32
    w1: (input_count, hidden_count)    -- already transposed vs. torch layout
    b1: (hidden_count,)
    w2: (hidden_count, output_count)   -- already transposed vs. torch layout
    b2: (output_count,)
    Returns (B, output_count) in `out_dtype` (float32 by default; pass
    jnp.bfloat16 to halve the writeback stream if downstream tolerates it).
    """
    B, d_in = x.shape
    d_hidden = w1.shape[1]
    d_out = w2.shape[1]

    tb = _choose_tile(B, block_b)
    b_pad = _round_up(B, tb)
    # Only pad the batch if the tile genuinely doesn't divide it.
    x_in = x if b_pad == B else jnp.pad(x, ((0, b_pad - B), (0, 0)))

    # Weights/biases are tiny; one-time casts/reshapes in the wrapper are fine.
    w1_bf = w1.astype(jnp.bfloat16)
    w2_bf = w2.astype(jnp.bfloat16)
    b1_2d = b1.reshape(1, d_hidden).astype(jnp.float32)
    b2_2d = b2.reshape(1, d_out).astype(jnp.float32)

    grid = (b_pad // tb,)

    out_itemsize = jnp.dtype(out_dtype).itemsize
    cost = pl.CostEstimate(
        flops=2 * b_pad * (d_in * d_hidden + d_hidden * d_out),
        transcendentals=b_pad * d_out,
        bytes_accessed=(x_in.size * 4                 # f32 activations in
                        + w1_bf.size * 2 + w2_bf.size * 2
                        + b1_2d.size * 4 + b2_2d.size * 4
                        + b_pad * d_out * out_itemsize),  # unpadded output
    )

    out = pl.pallas_call(
        _mlp_kernel,
        out_shape=jax.ShapeDtypeStruct((b_pad, d_out), out_dtype),
        grid=grid,
        in_specs=[
            # activations: tiled over the batch axis, f32 straight from HBM
            pl.BlockSpec((tb, d_in), lambda i: (i, 0)),
            # weights / biases: same block every step -> DMA once, VMEM-resident
            pl.BlockSpec((d_in, d_hidden), lambda i: (0, 0)),
            pl.BlockSpec((1, d_hidden), lambda i: (0, 0)),
            pl.BlockSpec((d_hidden, d_out), lambda i: (0, 0)),
            pl.BlockSpec((1, d_out), lambda i: (0, 0)),
        ],
        # true (tb, d_out) output block -- no lane padding, no post-slice
        out_specs=pl.BlockSpec((tb, d_out), lambda i: (i, 0)),
        compiler_params=pltpu.CompilerParams(
            dimension_semantics=("parallel",)),   # megacore: shard batch steps
        cost_estimate=cost,
    )(x_in, w1_bf, b1_2d, w2_bf, b2_2d)

    if b_pad != B:
        out = out[:B]
    return out


def init_params(key, input_count, hidden_count, output_count):
    """Deterministic init mimicking torch.nn.Linear default U[-1/sqrt(fan_in), 1/sqrt(fan_in)]."""
    k1, k2, k3, k4 = jax.random.split(key, 4)
    bound1 = 1.0 / jnp.sqrt(jnp.float32(input_count))
    bound2 = 1.0 / jnp.sqrt(jnp.float32(hidden_count))
    # Stored already transposed: (in, out)
    w1 = jax.random.uniform(k1, (input_count, hidden_count), jnp.float32, -bound1, bound1)
    b1 = jax.random.uniform(k2, (hidden_count,), jnp.float32, -bound1, bound1)
    w2 = jax.random.uniform(k3, (hidden_count, output_count), jnp.float32, -bound2, bound2)
    b2 = jax.random.uniform(k4, (output_count,), jnp.float32, -bound2, bound2)
    return w1, b1, w2, b2


def _ref_forward(x, w1, b1, w2, b2):
    """Pure-JAX reference with the same bf16 operand rounding as the kernel."""
    xb = x.astype(jnp.bfloat16).astype(jnp.float32)
    w1b = w1.astype(jnp.bfloat16).astype(jnp.float32)
    w2b = w2.astype(jnp.bfloat16).astype(jnp.float32)
    h = jnp.maximum(xb @ w1b + b1, 0.0)
    hb = h.astype(jnp.bfloat16).astype(jnp.float32)
    return jax.nn.sigmoid(hb @ w2b + b2)


if __name__ == "__main__":
    # Y_LEN / X_LEN are undefined globals in the original source; choose small
    # concrete values consistent with the forward pass.
    Y_LEN, X_LEN = 8, 8          # input_count = output_count = 64
    HIDDEN_COUNT = 32            # module default is 1; 32 exercises the MXU path
    BATCH = 1024                 # splits into 2 parallel steps of 512 on v7x

    input_count = Y_LEN * X_LEN
    output_count = Y_LEN * X_LEN

    key = jax.random.PRNGKey(0)
    kx, kp = jax.random.split(key)
    x = jax.random.normal(kx, (BATCH, input_count), jnp.float32)
    w1, b1, w2, b2 = init_params(kp, input_count, HIDDEN_COUNT, output_count)

    fwd = jax.jit(player_net_forward)
    out = jax.block_until_ready(fwd(x, w1, b1, w2, b2))

    ref = _ref_forward(x, w1, b1, w2, b2)
    assert out.shape == (BATCH, output_count)
    # bf16 matmul operands + approx reciprocal -> relaxed tolerance vs f32-ish ref
    # NOTE: pl.reciprocal(approx=True) is ~2^-11 relative; swap to an exact
    # divide if downstream logic thresholds near 0.5 or needs torch parity.
    assert jnp.allclose(out, ref, atol=2e-2, rtol=2e-2), \
        float(jnp.max(jnp.abs(out - ref)))

    print("KERNEL_OK")
</pallas_src>

<mosaic_0001>
module attributes {stable_mosaic.version = 11 : i64} {
  func.func @_mlp_kernel(%arg0: i32, %arg1: memref<512x64xf32, #tpu.memory_space<vmem>>, %arg2: memref<64x32xbf16, #tpu.memory_space<vmem>>, %arg3: memref<1x32xf32, #tpu.memory_space<vmem>>, %arg4: memref<32x64xbf16, #tpu.memory_space<vmem>>, %arg5: memref<1x64xf32, #tpu.memory_space<vmem>>, %arg6: memref<512x64xf32, #tpu.memory_space<vmem>>) attributes {dimension_semantics = [#tpu.dimension_semantics<parallel>], iteration_bounds = array<i64: 2>, scalar_prefetch = 0 : i64, scratch_operands = 0 : i64, tpu.core_type = #tpu.core_type<tc>, window_params = [{transform_indices = @transform_0, window_bounds = array<i64: 512, 64>}, {pipeline_mode = #tpu.pipeline_mode<synchronous>, transform_indices = @transform_1, window_bounds = array<i64: 64, 32>}, {pipeline_mode = #tpu.pipeline_mode<synchronous>, transform_indices = @transform_2, window_bounds = array<i64: 1, 32>}, {pipeline_mode = #tpu.pipeline_mode<synchronous>, transform_indices = @transform_3, window_bounds = array<i64: 32, 64>}, {pipeline_mode = #tpu.pipeline_mode<synchronous>, transform_indices = @transform_4, window_bounds = array<i64: 1, 64>}, {transform_indices = @transform_5, window_bounds = array<i64: 512, 64>}]} {
    %c0 = arith.constant 0 : index
    %c0_0 = arith.constant 0 : index
    %0 = vector.load %arg1[%c0, %c0_0] : memref<512x64xf32, #tpu.memory_space<vmem>>, vector<512x64xf32>
    %1 = arith.truncf %0 : vector<512x64xf32> to vector<512x64xbf16>
    %c0_1 = arith.constant 0 : index
    %c0_2 = arith.constant 0 : index
    %2 = vector.load %arg2[%c0_1, %c0_2] : memref<64x32xbf16, #tpu.memory_space<vmem>>, vector<64x32xbf16>
    %cst = arith.constant dense<0.000000e+00> : vector<512x32xf32>
    %3 = tpu.matmul %1, %2, %cst {dimension_numbers = #tpu.dot_dimension_numbers<[1], [0], [0], [1], [0, 0, 1, 1], [], []>} : vector<512x64xbf16>, vector<64x32xbf16>, vector<512x32xf32> -> vector<512x32xf32>
    %c0_3 = arith.constant 0 : index
    %c0_4 = arith.constant 0 : index
    %4 = vector.load %arg3[%c0_3, %c0_4] : memref<1x32xf32, #tpu.memory_space<vmem>>, vector<1x32xf32>
    %5 = vector.broadcast %4 : vector<1x32xf32> to vector<512x32xf32>
    %6 = arith.addf %3, %5 : vector<512x32xf32>
    %cst_5 = arith.constant 0.000000e+00 : f32
    %7 = vector.broadcast %cst_5 : f32 to vector<512x32xf32>
    %8 = arith.maximumf %6, %7 : vector<512x32xf32>
    %9 = arith.truncf %8 : vector<512x32xf32> to vector<512x32xbf16>
    %c0_6 = arith.constant 0 : index
    %c0_7 = arith.constant 0 : index
    %10 = vector.load %arg4[%c0_6, %c0_7] : memref<32x64xbf16, #tpu.memory_space<vmem>>, vector<32x64xbf16>
    %cst_8 = arith.constant dense<0.000000e+00> : vector<512x64xf32>
    %11 = tpu.matmul %9, %10, %cst_8 {dimension_numbers = #tpu.dot_dimension_numbers<[1], [0], [0], [1], [0, 0, 1, 1], [], []>} : vector<512x32xbf16>, vector<32x64xbf16>, vector<512x64xf32> -> vector<512x64xf32>
    %c0_9 = arith.constant 0 : index
    %c0_10 = arith.constant 0 : index
    %12 = vector.load %arg5[%c0_9, %c0_10] : memref<1x64xf32, #tpu.memory_space<vmem>>, vector<1x64xf32>
    %13 = vector.broadcast %12 : vector<1x64xf32> to vector<512x64xf32>
    %14 = arith.addf %11, %13 : vector<512x64xf32>
    %cst_11 = arith.constant 0.000000e+00 : f32
    %15 = vector.broadcast %cst_11 : f32 to vector<512x64xf32>
    %16 = arith.subf %15, %14 : vector<512x64xf32>
    %17 = math.exp %16 : vector<512x64xf32>
    %cst_12 = arith.constant 1.000000e+00 : f32
    %18 = vector.broadcast %cst_12 : f32 to vector<512x64xf32>
    %19 = arith.addf %18, %17 : vector<512x64xf32>
    %20 = tpu.reciprocal %19 {approx = true} : vector<512x64xf32> -> vector<512x64xf32>
    %c0_13 = arith.constant 0 : index
    %c0_14 = arith.constant 0 : index
    %21 = vector.load %arg6[%c0_13, %c0_14] : memref<512x64xf32, #tpu.memory_space<vmem>>, vector<512x64xf32>
    tpu.vector_store %arg6[%c0_13, %c0_14], %20 {strides = array<i32>} : memref<512x64xf32, #tpu.memory_space<vmem>>, vector<512x64xf32>,
    return
  }
  func.func @transform_0(%arg0: i32) -> (i32, i32) {
    %c0_i32 = arith.constant 0 : i32
    %c0_i32_0 = arith.constant 0 : i32
    return %arg0, %c0_i32 : i32, i32
  }
  func.func @transform_1(%arg0: i32) -> (i32, i32) {
    %c0_i32 = arith.constant 0 : i32
    %c0_i32_0 = arith.constant 0 : i32
    %c0_i32_1 = arith.constant 0 : i32
    return %c0_i32, %c0_i32_0 : i32, i32
  }
  func.func @transform_2(%arg0: i32) -> (i32, i32) {
    %c0_i32 = arith.constant 0 : i32
    %c0_i32_0 = arith.constant 0 : i32
    %c0_i32_1 = arith.constant 0 : i32
    return %c0_i32, %c0_i32_0 : i32, i32
  }
  func.func @transform_3(%arg0: i32) -> (i32, i32) {
    %c0_i32 = arith.constant 0 : i32
    %c0_i32_0 = arith.constant 0 : i32
    %c0_i32_1 = arith.constant 0 : i32
    return %c0_i32, %c0_i32_0 : i32, i32
  }
  func.func @transform_4(%arg0: i32) -> (i32, i32) {
    %c0_i32 = arith.constant 0 : i32
    %c0_i32_0 = arith.constant 0 : i32
    %c0_i32_1 = arith.constant 0 : i32
    return %c0_i32, %c0_i32_0 : i32, i32
  }
  func.func @transform_5(%arg0: i32) -> (i32, i32) {
    %c0_i32 = arith.constant 0 : i32
    %c0_i32_0 = arith.constant 0 : i32
    return %arg0, %c0_i32 : i32, i32
  }
}

</mosaic_0001>

<bundles_post_ra>
// kernel: player_net_forward.1
= control target key start
LH: loop header
LB: loop body
LE: loop exit
PB: predicated region body
PF: predicated region fallthrough
CT: control target
= control target key end

     0   :  { %s2297_s18 = smov 0   ;;  %s2734_s0 = inlined_call_operand.vmem [shape: f32[1024,64], index: 0, kind: input, shape index: {}]   ;;  %s2735_s1 = inlined_call_operand.vmem [shape: bf16[64,32], index: 1, kind: input, shape index: {}]   ;;  %s2736_s2 = inlined_call_operand.vmem [shape: f32[1,32], index: 2, kind: input, shape index: {}]   ;;  %s2737_s3 = inlined_call_operand.vmem [shape: bf16[32,64], index: 3, kind: input, shape index: {}]   ;;  %s2738_s4 = inlined_call_operand.vmem [shape: f32[1,64], index: 4, kind: input, shape index: {}]   ;;  %s2739_s5 = inlined_call_operand.vmem [shape: f32[1024,64], index: 5, kind: output, shape index: {}]  }
   0x1 LB: > { %s1695_s19 = sadd.s32 4294967295, %s2265_s18   ;;  %p1699_p0 = scmp.ge.s32.totalorder %s2265_s18, 1  ;;  %s2265_s18 = sphi %s2297_s18, %s15_s18  }
   0x2   : > { %p188_p1 = scmp.lt.s32.totalorder %s2265_s18, 3 }
   0x4   : > { %p189_p2 = pnand %p1699_p0, %p188_p1 }
   0x5   : > { %v1996_v0 = vld [vmem:[%s2735_s1] sm:$0xff] (!%p189_p2)   ;;  %s1700_s22 = sshll.u32 (!%p189_p2), %s1695_s19, 6  ;;  %v1997_v1 = vld [vmem:[%s2735_s1 + $0x8] sm:$0xff] (!%p189_p2)   ;;  %v1998_v2 = vld [vmem:[%s2735_s1 + $0x10] sm:$0xff] (!%p189_p2)   ;;  %vm364_vm0 = vcmask (!%p189_p2), 523264   ;;  %vm869_vm1 = vcmask (!%p189_p2), 261120  }
   0x6   : > { %192 = sbr.rel (%p189_p2) target bundleno = 616 (0x268), region = 40  ;;  %p217_p3 = scmp.lt.s32.totalorder (!%p189_p2), %s1700_s22, 127  ;;  %1848 = vmatprep.subr.bf16.mxu0 (!%p189_p2), %v1996_v0  ;;  %v1999_v5 = vld [vmem:[%s2735_s1 + $0x18] sm:$0xff] (!%p189_p2)  }
   0x7   : > { %1849 = vmatpush3.bf16.msra.mxu0 (!%p189_p2), %v1996_v0 }
   0x8   : > { %1850 = vmatprep.subr.bf16.mxu0 (!%p189_p2), %v1997_v1 }
   0xb   : > { %1851 = vmatpush3.bf16.msra.mxu0 (!%p189_p2), %v1997_v1 }
   0xc   : > { %1852 = vmatprep.subr.bf16.mxu0 (!%p189_p2), %v1998_v2 }
   0xd   : > { %s2741_s22 = smov (!%p217_p3, %s1700_s22), 127 }
   0xe   : > { %s1701_s27 = sshll.u32 %s2741_s22, 3 }
   0xf   : > { %s2322_s30 = scalar_lea.vmem %s2734_s0, %s1701_s27  ;;  %1853 = vmatpush3.bf16.msra.mxu0 %v1998_v2  ;;  %s2555_s19 = scalar_lea.vmem %s2739_s5, %s1701_s27 }
  0x10   : > { %v229_v3 = vld [vmem:[%s2322_s30] sm:$0xff]  ;;  %v230_v4 = vld [vmem:[%s2322_s30 + $0x8] sm:$0xff]  ;;  %v231_v7 = vld [vmem:[%s2322_s30 + $0x10] sm:$0xff]  ;;  %1854 = vmatprep.subr.bf16.mxu0 %v1999_v5 }
  0x11   : > { %v293_v6 = vpack.c.bf16 %v230_v4, %v229_v3  ;;  %v232_v8 = vld [vmem:[%s2322_s30 + $0x18] sm:$0xff]  ;;  %v233_v9 = vld [vmem:[%s2322_s30 + $0x20] sm:$0xff]  ;;  %v234_v10 = vld [vmem:[%s2322_s30 + $0x28] sm:$0xff] }
  0x12   : > { %v294_v11 = vpack.c.bf16 %v232_v8, %v231_v7  ;;  %v295_v12 = vpack.c.bf16 %v234_v10, %v233_v9  ;;  %v235_v13 = vld [vmem:[%s2322_s30 + $0x30] sm:$0xff]  ;;  %v236_v14 = vld [vmem:[%s2322_s30 + $0x38] sm:$0xff]  ;;  %v237_v15 = vld [vmem:[%s2322_s30 + $0x40] sm:$0xff] }
  0x13   : > { %1856 = vmatprep.mubr.msk.bf16.mxu0 %vm364_vm0, %v293_v6  ;;  %1855 = vmatpush3.bf16.msra.mxu0 %v1999_v5  ;;  %v238_v16 = vld [vmem:[%s2322_s30 + $0x48] sm:$0xff]  ;;  %v296_v17 = vpack.c.bf16 %v236_v14, %v235_v13  ;;  %v239_v19 = vld [vmem:[%s2322_s30 + $0x50] sm:$0xff]  ;;  %v240_v20 = vld [vmem:[%s2322_s30 + $0x58] sm:$0xff] }
  0x14   : > { %v297_v18 = vpack.c.bf16 %v238_v16, %v237_v15  ;;  %v241_v21 = vld [vmem:[%s2322_s30 + $0x60] sm:$0xff]  ;;  %v242_v22 = vld [vmem:[%s2322_s30 + $0x68] sm:$0xff]  ;;  %v298_v23 = vpack.c.bf16 %v240_v20, %v239_v19  ;;  %v243_v25 = vld [vmem:[%s2322_s30 + $0x70] sm:$0xff] }
  0x15   : > { %v299_v24 = vpack.c.bf16 %v242_v22, %v241_v21  ;;  %v244_v26 = vld [vmem:[%s2322_s30 + $0x78] sm:$0xff]  ;;  %v245_v27 = vld [vmem:[%s2322_s30 + $0x80] sm:$0xff]  ;;  %v246_v28 = vld [vmem:[%s2322_s30 + $0x88] sm:$0xff] }
  0x16   : > { %1857 = vmatmul.mubr.msk.bf16.vlgmr.msra.gmra.mrb[0].mxu0 %vm364_vm0, %v294_v11  ;;  %v300_v29 = vpack.c.bf16 %v244_v26, %v243_v25  ;;  %v301_v30 = vpack.c.bf16 %v246_v28, %v245_v27  ;;  %v247_v31 = vld [vmem:[%s2322_s30 + $0x90] sm:$0xff]  ;;  %v248_v32 = vld [vmem:[%s2322_s30 + $0x98] sm:$0xff]  ;;  %v249_v33 = vld [vmem:[%s2322_s30 + $0xa0] sm:$0xff] }
  0x17   : > { %1860 = vmatprep.mubr.msk.bf16.mxu0 %vm364_vm0, %v295_v12  ;;  %v250_v34 = vld [vmem:[%s2322_s30 + $0xa8] sm:$0xff]  ;;  %v302_v35 = vpack.c.bf16 %v248_v32, %v247_v31  ;;  %v251_v37 = vld [vmem:[%s2322_s30 + $0xb0] sm:$0xff]  ;;  %v252_v38 = vld [vmem:[%s2322_s30 + $0xb8] sm:$0xff] }
  0x18   : > { %v303_v36 = vpack.c.bf16 %v250_v34, %v249_v33  ;;  %v253_v39 = vld [vmem:[%s2322_s30 + $0xc0] sm:$0xff]  ;;  %v254_v40 = vld [vmem:[%s2322_s30 + $0xc8] sm:$0xff]  ;;  %v304_v41 = vpack.c.bf16 %v252_v38, %v251_v37  ;;  %v255_v43 = vld [vmem:[%s2322_s30 + $0xd0] sm:$0xff] }
  0x19   : > { %v305_v42 = vpack.c.bf16 %v254_v40, %v253_v39  ;;  %v256_v44 = vld [vmem:[%s2322_s30 + $0xd8] sm:$0xff]  ;;  %v257_v45 = vld [vmem:[%s2322_s30 + $0xe0] sm:$0xff]  ;;  %v258_v46 = vld [vmem:[%s2322_s30 + $0xe8] sm:$0xff] }
  0x1a   : > { %v306_v47 = vpack.c.bf16 %v256_v44, %v255_v43  ;;  %v307_v48 = vpack.c.bf16 %v258_v46, %v257_v45  ;;  %v259_v49 = vld [vmem:[%s2322_s30 + $0xf0] sm:$0xff]  ;;  %v260_v50 = vld [vmem:[%s2322_s30 + $0xf8] sm:$0xff]  ;;  %v261_v51 = vld [vmem:[%s2322_s30 + $0x100] sm:$0xff] }
  0x1b   : > { %v262_v52 = vld [vmem:[%s2322_s30 + $0x108] sm:$0xff]  ;;  %v308_v53 = vpack.c.bf16 %v260_v50, %v259_v49  ;;  %v263_v55 = vld [vmem:[%s2322_s30 + $0x110] sm:$0xff]  ;;  %v264_v56 = vld [vmem:[%s2322_s30 + $0x118] sm:$0xff] }
  0x1c   : > { %v309_v54 = vpack.c.bf16 %v262_v52, %v261_v51  ;;  %v265_v57 = vld [vmem:[%s2322_s30 + $0x120] sm:$0xff]  ;;  %v266_v58 = vld [vmem:[%s2322_s30 + $0x128] sm:$0xff]  ;;  %v310_v59 = vpack.c.bf16 %v264_v56, %v263_v55  ;;  %v267_v61 = vld [vmem:[%s2322_s30 + $0x130] sm:$0xff] }
  0x1d   : > { %v311_v60 = vpack.c.bf16 %v266_v58, %v265_v57  ;;  %v268_v62 = vld [vmem:[%s2322_s30 + $0x138] sm:$0xff]  ;;  %v269_v63 = vld [vmem:[%s2322_s30 + $0x140] sm:$0xff]  ;;  %v270_v0 = vld [vmem:[%s2322_s30 + $0x148] sm:$0xff] }
  0x1e   : > { %1861 = vmatmul.mubr.msk.bf16.gmra.mrb[4].mxu0 %vm364_vm0, %v296_v17  ;;  %v312_v1 = vpack.c.bf16 %v268_v62, %v267_v61  ;;  %v313_v2 = vpack.c.bf16 %v270_v0, %v269_v63  ;;  %v271_v3 = vld [vmem:[%s2322_s30 + $0x150] sm:$0xff]  ;;  %v272_v4 = vld [vmem:[%s2322_s30 + $0x158] sm:$0xff]  ;;  %v273_v5 = vld [vmem:[%s2322_s30 + $0x160] sm:$0xff] }
  0x1f   : > { %1864 = vmatprep.mubr.msk.bf16.mxu0 %vm364_vm0, %v297_v18  ;;  %v274_v6 = vld [vmem:[%s2322_s30 + $0x168] sm:$0xff]  ;;  %v314_v7 = vpack.c.bf16 %v272_v4, %v271_v3  ;;  %v275_v9 = vld [vmem:[%s2322_s30 + $0x170] sm:$0xff]  ;;  %v276_v10 = vld [vmem:[%s2322_s30 + $0x178] sm:$0xff] }
  0x20   : > { %v315_v8 = vpack.c.bf16 %v274_v6, %v273_v5  ;;  %v277_v11 = vld [vmem:[%s2322_s30 + $0x180] sm:$0xff]  ;;  %v278_v12 = vld [vmem:[%s2322_s30 + $0x188] sm:$0xff]  ;;  %v316_v13 = vpack.c.bf16 %v276_v10, %v275_v9  ;;  %v279_v17 = vld [vmem:[%s2322_s30 + $0x190] sm:$0xff] }
  0x21   : > { %v2000_v14 = vld [vmem:[%s2737_s3] sm:$0xff]   ;;  %v317_v15 = vpack.c.bf16 %v278_v12, %v277_v11  ;;  %v2001_v16 = vld [vmem:[%s2737_s3 + $0x8] sm:$0xff]   ;;  %v280_v18 = vld [vmem:[%s2322_s30 + $0x198] sm:$0xff] }
  0x22   : > { %1920 = vmatprep.subr.bf16.mxu1 %v2000_v14  ;;  %v281_v19 = vld [vmem:[%s2322_s30 + $0x1a0] sm:$0xff]  ;;  %v282_v20 = vld [vmem:[%s2322_s30 + $0x1a8] sm:$0xff]  ;;  %v318_v21 = vpack.c.bf16 %v280_v18, %v279_v17 }
  0x23   : > { %1921 = vmatpush3.bf16.msra.mxu1 %v2000_v14  ;;  %v319_v22 = vpack.c.bf16 %v282_v20, %v281_v19  ;;  %v285_v25 = vld [vmem:[%s2322_s30 + $0x1c0] sm:$0xff]  ;;  %v286_v26 = vld [vmem:[%s2322_s30 + $0x1c8] sm:$0xff] }
  0x24   : > { %1922 = vmatprep.subr.bf16.mxu1 %v2001_v16  ;;  %v321_v28 = vpack.c.bf16 %v286_v26, %v285_v25  ;;  %v289_v31 = vld [vmem:[%s2322_s30 + $0x1e0] sm:$0xff]  ;;  %v290_v32 = vld [vmem:[%s2322_s30 + $0x1e8] sm:$0xff] }
  0x25   : > { %v323_v34 = vpack.c.bf16 %v290_v32, %v289_v31  ;;  %v2432_v38 = vld [vmem:[%s2736_s2] ss:$0 sm:$0xff] }
  0x26   : > { %1865 = vmatmul.mubr.msk.bf16.gmra.mrb[8].mxu0 %vm364_vm0, %v298_v23  ;;  %v283_v23 = vld [vmem:[%s2322_s30 + $0x1b0] sm:$0xff] }
  0x27   : > { %1868 = vmatprep.mubr.msk.bf16.mxu0 %vm364_vm0, %v299_v24  ;;  %1923 = vmatpush3.bf16.msra.mxu1 %v2001_v16  ;;  %v284_v24 = vld [vmem:[%s2322_s30 + $0x1b8] sm:$0xff] }
  0x28   : > { %v320_v27 = vpack.c.bf16 %v284_v24, %v283_v23 }
  0x2e   : > { %1869 = vmatmul.mubr.msk.bf16.gmra.mrb[12].mxu0 %vm364_vm0, %v300_v29  ;;  %v287_v29 = vld [vmem:[%s2322_s30 + $0x1d0] sm:$0xff] }
  0x2f   : > { %1872 = vmatprep.mubr.msk.bf16.mxu0 %vm364_vm0, %v301_v30  ;;  %v288_v30 = vld [vmem:[%s2322_s30 + $0x1d8] sm:$0xff] }
  0x30   : > { %v322_v33 = vpack.c.bf16 %v288_v30, %v287_v29 }
  0x36   : > { %1873 = vmatmul.mubr.msk.bf16.gmra.mrb[16].mxu0 %vm364_vm0, %v302_v35  ;;  %v291_v35 = vld [vmem:[%s2322_s30 + $0x1f0] sm:$0xff] }
  0x37   : > { %1876 = vmatprep.mubr.msk.bf16.mxu0 %vm364_vm0, %v303_v36  ;;  %v292_v36 = vld [vmem:[%s2322_s30 + $0x1f8] sm:$0xff] }
  0x38   : > { %v324_v37 = vpack.c.bf16 %v292_v36, %v291_v35 }
  0x3e   : > { %1877 = vmatmul.mubr.msk.bf16.gmra.mrb[20].mxu0 %vm364_vm0, %v304_v41 }
  0x3f   : > { %1880 = vmatprep.mubr.msk.bf16.mxu0 %vm364_vm0, %v305_v42 }
  0x46   : > { %1881 = vmatmul.mubr.msk.bf16.gmra.mrb[24].mxu0 %vm364_vm0, %v306_v47 }
  0x47   : > { %1884 = vmatprep.mubr.msk.bf16.mxu0 %vm364_vm0, %v307_v48 }
  0x4e   : > { %1885 = vmatmul.mubr.msk.bf16.gmra.mrb[28].mxu0 %vm364_vm0, %v308_v53 }
  0x4f   : > { %1888 = vmatprep.mubr.msk.bf16.mxu0 %vm364_vm0, %v309_v54 }
  0x56   : > { %1889 = vmatmul.mubr.msk.bf16.gmra.mrb[32].mxu0 %vm364_vm0, %v310_v59 }
  0x57   : > { %1892 = vmatprep.mubr.msk.bf16.mxu0 %vm364_vm0, %v311_v60 }
  0x5e   : > { %1893 = vmatmul.mubr.msk.bf16.gmra.mrb[36].mxu0 %vm364_vm0, %v312_v1 }
  0x5f   : > { %1896 = vmatprep.mubr.msk.bf16.mxu0 %vm364_vm0, %v313_v2 }
  0x66   : > { %1897 = vmatmul.mubr.msk.bf16.gmra.mrb[40].mxu0 %vm364_vm0, %v314_v7 }
  0x67   : > { %1900 = vmatprep.mubr.msk.bf16.mxu0 %vm364_vm0, %v315_v8 }
  0x6e   : > { %1901 = vmatmul.mubr.msk.bf16.gmra.mrb[44].mxu0 %vm364_vm0, %v316_v13 }
  0x6f   : > { %1904 = vmatprep.mubr.msk.bf16.mxu0 %vm364_vm0, %v317_v15 }
  0x76   : > { %1905 = vmatmul.mubr.msk.bf16.gmra.mrb[48].mxu0 %vm364_vm0, %v318_v21 }
  0x77   : > { %1908 = vmatprep.mubr.msk.bf16.mxu0 %vm364_vm0, %v319_v22 }
  0x7e   : > { %1909 = vmatmul.mubr.msk.bf16.gmra.mrb[52].mxu0 %vm364_vm0, %v320_v27 }
  0x7f   : > { %1912 = vmatprep.mubr.msk.bf16.mxu0 %vm364_vm0, %v321_v28 }
  0x86   : > { %1913 = vmatmul.mubr.msk.bf16.gmra.mrb[56].mxu0 %vm364_vm0, %v322_v33 }
  0x87   : > { %1916 = vmatprep.mubr.msk.bf16.mxu0 %vm364_vm0, %v323_v34 }
  0x8e   : > { %1917 = vmatmul.mubr.msk.bf16.gmra.mrb[60].mxu0 %vm364_vm0, %v324_v37 }
  0xe9   : > { %v1858_v39 = vpop.f32.mrb[0].mxu0 }
  0xea   : > { %v504_v40 = vadd.f32 %v1858_v39, %v2432_v38  ;;  %v495_v41 = vpop.f32.mrb[1].mxu0 }
  0xeb   : > { %v496_v42 = vadd.f32 %v2432_v38, %v495_v41  ;;  %v1859_v43 = vpop.f32.mrb[2].mxu0 }
  0xec   : > { %v507_v44 = vadd.f32 %v1859_v43, %v2432_v38  ;;  %v498_v45 = vpop.f32.mrb[3].mxu0  ;;  %v752_v47 = vmax.f32 %v504_v40, 0.0 }
  0xed   : > { %v499_v46 = vadd.f32 %v2432_v38, %v498_v45  ;;  %v750_v49 = vmax.f32 %v496_v42, 0.0 }
  0xee   : > { %v753_v48 = vmax.f32 %v507_v44, 0.0 }
  0xef   : > { %v751_v50 = vmax.f32 %v499_v46, 0.0 }
  0xf0   : > { %v815_v51 = vpack.c.bf16 %v753_v48, %v752_v47 }
  0xf1   : > { %v1862_v52 = vpop.f32.mrb[4].mxu0  ;;  %v814_v53 = vpack.c.bf16 %v751_v50, %v750_v49 }
  0xf2   : > { %v520_v54 = vadd.f32 %v1862_v52, %v2432_v38  ;;  %v511_v55 = vpop.f32.mrb[5].mxu0 }
  0xf3   : > { %v512_v56 = vadd.f32 %v2432_v38, %v511_v55  ;;  %v1863_v57 = vpop.f32.mrb[6].mxu0  ;;  %1924 = vmatprep.mubr.msk.bf16.mxu1 %vm869_vm1, %v814_v53 }
  0xf4   : > { %v523_v58 = vadd.f32 %v1863_v57, %v2432_v38  ;;  %v514_v59 = vpop.f32.mrb[7].mxu0  ;;  %1925 = vmatmul.mubr.msk.bf16.vlgmr.msra.gmra.mrb[0].mxu1 %vm869_vm1, %v815_v51  ;;  %v756_v61 = vmax.f32 %v520_v54, 0.0 }
  0xf5   : > { %v515_v60 = vadd.f32 %v2432_v38, %v514_v59  ;;  %v754_v63 = vmax.f32 %v512_v56, 0.0 }
  0xf6   : > { %v757_v62 = vmax.f32 %v523_v58, 0.0 }
  0xf7   : > { %v755_v0 = vmax.f32 %v515_v60, 0.0 }
  0xf8   : > { %v817_v1 = vpack.c.bf16 %v757_v62, %v756_v61 }
  0xf9   : > { %v816_v2 = vpack.c.bf16 %v755_v0, %v754_v63  ;;  %v1866_v3 = vpop.f32.mrb[8].mxu0 }
  0xfa   : > { %v536_v4 = vadd.f32 %v1866_v3, %v2432_v38  ;;  %v527_v5 = vpop.f32.mrb[9].mxu0 }
  0xfb   : > { %v528_v6 = vadd.f32 %v2432_v38, %v527_v5  ;;  %v1867_v7 = vpop.f32.mrb[10].mxu0  ;;  %1928 = vmatprep.mubr.msk.bf16.mxu1 %vm869_vm1, %v816_v2 }
  0xfc   : > { %v539_v8 = vadd.f32 %v1867_v7, %v2432_v38  ;;  %v530_v9 = vpop.f32.mrb[11].mxu0  ;;  %1929 = vmatmul.mubr.msk.bf16.gmra.mrb[4].mxu1 %vm869_vm1, %v817_v1  ;;  %v760_v11 = vmax.f32 %v536_v4, 0.0 }
  0xfd   : > { %v531_v10 = vadd.f32 %v2432_v38, %v530_v9  ;;  %v758_v13 = vmax.f32 %v528_v6, 0.0 }
  0xfe   : > { %v761_v12 = vmax.f32 %v539_v8, 0.0 }
  0xff   : > { %v759_v14 = vmax.f32 %v531_v10, 0.0 }
 0x100   : > { %v819_v15 = vpack.c.bf16 %v761_v12, %v760_v11 }
 0x101   : > { %v818_v16 = vpack.c.bf16 %v759_v14, %v758_v13  ;;  %v1870_v17 = vpop.f32.mrb[12].mxu0 }
 0x102   : > { %v552_v18 = vadd.f32 %v1870_v17, %v2432_v38  ;;  %v543_v19 = vpop.f32.mrb[13].mxu0 }
 0x103   : > { %v544_v20 = vadd.f32 %v2432_v38, %v543_v19  ;;  %v1871_v21 = vpop.f32.mrb[14].mxu0  ;;  %1932 = vmatprep.mubr.msk.bf16.mxu1 %vm869_vm1, %v818_v16 }
 0x104   : > { %v555_v22 = vadd.f32 %v1871_v21, %v2432_v38  ;;  %v546_v23 = vpop.f32.mrb[15].mxu0  ;;  %1933 = vmatmul.mubr.msk.bf16.gmra.mrb[8].mxu1 %vm869_vm1, %v819_v15  ;;  %v764_v25 = vmax.f32 %v552_v18, 0.0 }
 0x105   : > { %v547_v24 = vadd.f32 %v2432_v38, %v546_v23  ;;  %v762_v27 = vmax.f32 %v544_v20, 0.0 }
 0x106   : > { %v765_v26 = vmax.f32 %v555_v22, 0.0 }
 0x107   : > { %v763_v28 = vmax.f32 %v547_v24, 0.0 }
 0x108   : > { %v821_v29 = vpack.c.bf16 %v765_v26, %v764_v25 }
 0x109   : > { %v820_v30 = vpack.c.bf16 %v763_v28, %v762_v27  ;;  %v1874_v31 = vpop.f32.mrb[16].mxu0 }
 0x10a   : > { %v568_v32 = vadd.f32 %v1874_v31, %v2432_v38  ;;  %v559_v33 = vpop.f32.mrb[17].mxu0 }
 0x10b   : > { %v560_v34 = vadd.f32 %v2432_v38, %v559_v33  ;;  %v1875_v35 = vpop.f32.mrb[18].mxu0  ;;  %1936 = vmatprep.mubr.msk.bf16.mxu1 %vm869_vm1, %v820_v30 }
 0x10c   : > { %v571_v36 = vadd.f32 %v1875_v35, %v2432_v38  ;;  %v562_v37 = vpop.f32.mrb[19].mxu0  ;;  %1937 = vmatmul.mubr.msk.bf16.gmra.mrb[12].mxu1 %vm869_vm1, %v821_v29  ;;  %v768_v40 = vmax.f32 %v568_v32, 0.0 }
 0x10d   : > { %v563_v39 = vadd.f32 %v2432_v38, %v562_v37  ;;  %v766_v42 = vmax.f32 %v560_v34, 0.0 }
 0x10e   : > { %v769_v41 = vmax.f32 %v571_v36, 0.0 }
 0x10f   : > { %v767_v43 = vmax.f32 %v563_v39, 0.0 }
 0x110   : > { %v823_v44 = vpack.c.bf16 %v769_v41, %v768_v40 }
 0x111   : > { %v822_v45 = vpack.c.bf16 %v767_v43, %v766_v42  ;;  %v1878_v46 = vpop.f32.mrb[20].mxu0 }
 0x112   : > { %v584_v47 = vadd.f32 %v1878_v46, %v2432_v38  ;;  %v575_v48 = vpop.f32.mrb[21].mxu0 }
 0x113   : > { %v576_v49 = vadd.f32 %v2432_v38, %v575_v48  ;;  %v1879_v50 = vpop.f32.mrb[22].mxu0  ;;  %1940 = vmatprep.mubr.msk.bf16.mxu1 %vm869_vm1, %v822_v45 }
 0x114   : > { %v587_v51 = vadd.f32 %v1879_v50, %v2432_v38  ;;  %v578_v52 = vpop.f32.mrb[23].mxu0  ;;  %1941 = vmatmul.mubr.msk.bf16.gmra.mrb[16].mxu1 %vm869_vm1, %v823_v44  ;;  %v772_v54 = vmax.f32 %v584_v47, 0.0 }
 0x115   : > { %v579_v53 = vadd.f32 %v2432_v38, %v578_v52  ;;  %v770_v56 = vmax.f32 %v576_v49, 0.0 }
 0x116   : > { %v773_v55 = vmax.f32 %v587_v51, 0.0 }
 0x117   : > { %v771_v57 = vmax.f32 %v579_v53, 0.0 }
 0x118   : > { %v825_v58 = vpack.c.bf16 %v773_v55, %v772_v54 }
 0x119   : > { %v824_v59 = vpack.c.bf16 %v771_v57, %v770_v56  ;;  %v1882_v60 = vpop.f32.mrb[24].mxu0 }
 0x11a   : > { %v600_v61 = vadd.f32 %v1882_v60, %v2432_v38  ;;  %v591_v62 = vpop.f32.mrb[25].mxu0 }
 0x11b   : > { %v592_v63 = vadd.f32 %v2432_v38, %v591_v62  ;;  %v1883_v0 = vpop.f32.mrb[26].mxu0  ;;  %1944 = vmatprep.mubr.msk.bf16.mxu1 %vm869_vm1, %v824_v59 }
 0x11c   : > { %v603_v1 = vadd.f32 %v1883_v0, %v2432_v38  ;;  %v594_v2 = vpop.f32.mrb[27].mxu0  ;;  %1945 = vmatmul.mubr.msk.bf16.gmra.mrb[20].mxu1 %vm869_vm1, %v825_v58  ;;  %v776_v4 = vmax.f32 %v600_v61, 0.0 }
 0x11d   : > { %v595_v3 = vadd.f32 %v2432_v38, %v594_v2  ;;  %v774_v6 = vmax.f32 %v592_v63, 0.0 }
 0x11e   : > { %v777_v5 = vmax.f32 %v603_v1, 0.0 }
 0x11f   : > { %v775_v7 = vmax.f32 %v595_v3, 0.0 }
 0x120   : > { %v827_v8 = vpack.c.bf16 %v777_v5, %v776_v4 }
 0x121   : > { %v826_v9 = vpack.c.bf16 %v775_v7, %v774_v6  ;;  %v1886_v10 = vpop.f32.mrb[28].mxu0 }
 0x122   : > { %v616_v11 = vadd.f32 %v1886_v10, %v2432_v38  ;;  %v607_v12 = vpop.f32.mrb[29].mxu0 }
 0x123   : > { %v608_v13 = vadd.f32 %v2432_v38, %v607_v12  ;;  %v1887_v14 = vpop.f32.mrb[30].mxu0  ;;  %1948 = vmatprep.mubr.msk.bf16.mxu1 %vm869_vm1, %v826_v9 }
 0x124   : > { %v619_v15 = vadd.f32 %v1887_v14, %v2432_v38  ;;  %v610_v16 = vpop.f32.mrb[31].mxu0  ;;  %1949 = vmatmul.mubr.msk.bf16.gmra.mrb[24].mxu1 %vm869_vm1, %v827_v8  ;;  %v780_v18 = vmax.f32 %v616_v11, 0.0 }
 0x125   : > { %v611_v17 = vadd.f32 %v2432_v38, %v610_v16  ;;  %v778_v20 = vmax.f32 %v608_v13, 0.0 }
 0x126   : > { %v781_v19 = vmax.f32 %v619_v15, 0.0 }
 0x127   : > { %v779_v21 = vmax.f32 %v611_v17, 0.0 }
 0x128   : > { %v829_v22 = vpack.c.bf16 %v781_v19, %v780_v18 }
 0x129   : > { %v828_v23 = vpack.c.bf16 %v779_v21, %v778_v20  ;;  %v1890_v24 = vpop.f32.mrb[32].mxu0 }
 0x12a   : > { %v632_v25 = vadd.f32 %v1890_v24, %v2432_v38  ;;  %v623_v26 = vpop.f32.mrb[33].mxu0 }
 0x12b   : > { %v624_v27 = vadd.f32 %v2432_v38, %v623_v26  ;;  %v1891_v28 = vpop.f32.mrb[34].mxu0  ;;  %1952 = vmatprep.mubr.msk.bf16.mxu1 %vm869_vm1, %v828_v23 }
 0x12c   : > { %v635_v29 = vadd.f32 %v1891_v28, %v2432_v38  ;;  %v626_v30 = vpop.f32.mrb[35].mxu0  ;;  %1953 = vmatmul.mubr.msk.bf16.gmra.mrb[28].mxu1 %vm869_vm1, %v829_v22  ;;  %v784_v32 = vmax.f32 %v632_v25, 0.0 }
 0x12d   : > { %v627_v31 = vadd.f32 %v2432_v38, %v626_v30  ;;  %v782_v34 = vmax.f32 %v624_v27, 0.0 }
 0x12e   : > { %v785_v33 = vmax.f32 %v635_v29, 0.0 }
 0x12f   : > { %v783_v35 = vmax.f32 %v627_v31, 0.0 }
 0x130   : > { %v831_v36 = vpack.c.bf16 %v785_v33, %v784_v32 }
 0x131   : > { %v830_v37 = vpack.c.bf16 %v783_v35, %v782_v34  ;;  %v1894_v39 = vpop.f32.mrb[36].mxu0 }
 0x132   : > { %v648_v40 = vadd.f32 %v1894_v39, %v2432_v38  ;;  %v639_v41 = vpop.f32.mrb[37].mxu0 }
 0x133   : > { %v640_v42 = vadd.f32 %v2432_v38, %v639_v41  ;;  %v1895_v43 = vpop.f32.mrb[38].mxu0  ;;  %1956 = vmatprep.mubr.msk.bf16.mxu1 %vm869_vm1, %v830_v37 }
 0x134   : > { %v651_v44 = vadd.f32 %v1895_v43, %v2432_v38  ;;  %v642_v45 = vpop.f32.mrb[39].mxu0  ;;  %1957 = vmatmul.mubr.msk.bf16.gmra.mrb[32].mxu1 %vm869_vm1, %v831_v36  ;;  %v788_v47 = vmax.f32 %v648_v40, 0.0 }
 0x135   : > { %v643_v46 = vadd.f32 %v2432_v38, %v642_v45  ;;  %v786_v49 = vmax.f32 %v640_v42, 0.0 }
 0x136   : > { %v789_v48 = vmax.f32 %v651_v44, 0.0 }
 0x137   : > { %v787_v50 = vmax.f32 %v643_v46, 0.0 }
 0x138   : > { %v833_v51 = vpack.c.bf16 %v789_v48, %v788_v47 }
 0x139   : > { %v832_v52 = vpack.c.bf16 %v787_v50, %v786_v49  ;;  %v1898_v53 = vpop.f32.mrb[40].mxu0 }
 0x13a   : > { %v664_v54 = vadd.f32 %v1898_v53, %v2432_v38  ;;  %v655_v55 = vpop.f32.mrb[41].mxu0 }
 0x13b   : > { %v656_v56 = vadd.f32 %v2432_v38, %v655_v55  ;;  %v1899_v57 = vpop.f32.mrb[42].mxu0  ;;  %1960 = vmatprep.mubr.msk.bf16.mxu1 %vm869_vm1, %v832_v52 }
 0x13c   : > { %v667_v58 = vadd.f32 %v1899_v57, %v2432_v38  ;;  %v658_v59 = vpop.f32.mrb[43].mxu0  ;;  %1961 = vmatmul.mubr.msk.bf16.gmra.mrb[36].mxu1 %vm869_vm1, %v833_v51  ;;  %v792_v61 = vmax.f32 %v664_v54, 0.0 }
 0x13d   : > { %v659_v60 = vadd.f32 %v2432_v38, %v658_v59  ;;  %v790_v63 = vmax.f32 %v656_v56, 0.0 }
 0x13e   : > { %v793_v62 = vmax.f32 %v667_v58, 0.0 }
 0x13f   : > { %v791_v0 = vmax.f32 %v659_v60, 0.0 }
 0x140   : > { %v835_v1 = vpack.c.bf16 %v793_v62, %v792_v61 }
 0x141   : > { %v834_v2 = vpack.c.bf16 %v791_v0, %v790_v63  ;;  %v1902_v3 = vpop.f32.mrb[44].mxu0 }
 0x142   : > { %v680_v4 = vadd.f32 %v1902_v3, %v2432_v38  ;;  %v671_v5 = vpop.f32.mrb[45].mxu0 }
 0x143   : > { %v672_v6 = vadd.f32 %v2432_v38, %v671_v5  ;;  %v1903_v7 = vpop.f32.mrb[46].mxu0  ;;  %1964 = vmatprep.mubr.msk.bf16.mxu1 %vm869_vm1, %v834_v2 }
 0x144   : > { %v683_v8 = vadd.f32 %v1903_v7, %v2432_v38  ;;  %v674_v9 = vpop.f32.mrb[47].mxu0  ;;  %1965 = vmatmul.mubr.msk.bf16.gmra.mrb[40].mxu1 %vm869_vm1, %v835_v1  ;;  %v796_v11 = vmax.f32 %v680_v4, 0.0 }
 0x145   : > { %v675_v10 = vadd.f32 %v2432_v38, %v674_v9  ;;  %v794_v13 = vmax.f32 %v672_v6, 0.0 }
 0x146   : > { %v797_v12 = vmax.f32 %v683_v8, 0.0 }
 0x147   : > { %v795_v14 = vmax.f32 %v675_v10, 0.0  ;;  %v2533_v10 = vld [vmem:[%s2738_s4] ss:$0 sm:$0xff] }
 0x148   : > { %v837_v15 = vpack.c.bf16 %v797_v12, %v796_v11 }
 0x149   : > { %v836_v16 = vpack.c.bf16 %v795_v14, %v794_v13  ;;  %v1906_v17 = vpop.f32.mrb[48].mxu0 }
 0x14a   : > { %v696_v18 = vadd.f32 %v1906_v17, %v2432_v38  ;;  %v687_v19 = vpop.f32.mrb[49].mxu0 }
 0x14b   : > { %v688_v20 = vadd.f32 %v2432_v38, %v687_v19  ;;  %v1907_v21 = vpop.f32.mrb[50].mxu0  ;;  %1968 = vmatprep.mubr.msk.bf16.mxu1 %vm869_vm1, %v836_v16 }
 0x14c   : > { %v699_v22 = vadd.f32 %v1907_v21, %v2432_v38  ;;  %v690_v23 = vpop.f32.mrb[51].mxu0  ;;  %1969 = vmatmul.mubr.msk.bf16.gmra.mrb[44].mxu1 %vm869_vm1, %v837_v15  ;;  %v800_v25 = vmax.f32 %v696_v18, 0.0 }
 0x14d   : > { %v691_v24 = vadd.f32 %v2432_v38, %v690_v23  ;;  %v798_v27 = vmax.f32 %v688_v20, 0.0 }
 0x14e   : > { %v801_v26 = vmax.f32 %v699_v22, 0.0 }
 0x14f   : > { %v799_v28 = vmax.f32 %v691_v24, 0.0 }
 0x150   : > { %v839_v29 = vpack.c.bf16 %v801_v26, %v800_v25 }
 0x151   : > { %v838_v30 = vpack.c.bf16 %v799_v28, %v798_v27  ;;  %v1910_v31 = vpop.f32.mrb[52].mxu0 }
 0x152   : > { %v712_v32 = vadd.f32 %v1910_v31, %v2432_v38  ;;  %v703_v33 = vpop.f32.mrb[53].mxu0 }
 0x153   : > { %v704_v34 = vadd.f32 %v2432_v38, %v703_v33  ;;  %v1911_v35 = vpop.f32.mrb[54].mxu0  ;;  %1972 = vmatprep.mubr.msk.bf16.mxu1 %vm869_vm1, %v838_v30 }
 0x154   : > { %v715_v36 = vadd.f32 %v1911_v35, %v2432_v38  ;;  %v706_v37 = vpop.f32.mrb[55].mxu0  ;;  %1973 = vmatmul.mubr.msk.bf16.gmra.mrb[48].mxu1 %vm869_vm1, %v839_v29  ;;  %v804_v40 = vmax.f32 %v712_v32, 0.0 }
 0x155   : > { %v707_v39 = vadd.f32 %v2432_v38, %v706_v37  ;;  %v802_v42 = vmax.f32 %v704_v34, 0.0 }
 0x156   : > { %v805_v41 = vmax.f32 %v715_v36, 0.0 }
 0x157   : > { %v803_v43 = vmax.f32 %v707_v39, 0.0 }
 0x158   : > { %v841_v44 = vpack.c.bf16 %v805_v41, %v804_v40 }
 0x159   : > { %v840_v45 = vpack.c.bf16 %v803_v43, %v802_v42  ;;  %v1914_v46 = vpop.f32.mrb[56].mxu0 }
 0x15a   : > { %v728_v47 = vadd.f32 %v1914_v46, %v2432_v38  ;;  %v719_v48 = vpop.f32.mrb[57].mxu0 }
 0x15b   : > { %v720_v49 = vadd.f32 %v2432_v38, %v719_v48  ;;  %v1915_v50 = vpop.f32.mrb[58].mxu0  ;;  %1976 = vmatprep.mubr.msk.bf16.mxu1 %vm869_vm1, %v840_v45 }
 0x15c   : > { %v731_v51 = vadd.f32 %v1915_v50, %v2432_v38  ;;  %v722_v52 = vpop.f32.mrb[59].mxu0  ;;  %1977 = vmatmul.mubr.msk.bf16.gmra.mrb[52].mxu1 %vm869_vm1, %v841_v44  ;;  %v808_v54 = vmax.f32 %v728_v47, 0.0 }
 0x15d   : > { %v723_v53 = vadd.f32 %v2432_v38, %v722_v52  ;;  %v806_v56 = vmax.f32 %v720_v49, 0.0 }
 0x15e   : > { %v809_v55 = vmax.f32 %v731_v51, 0.0 }
 0x15f   : > { %v807_v57 = vmax.f32 %v723_v53, 0.0 }
 0x160   : > { %v843_v58 = vpack.c.bf16 %v809_v55, %v808_v54 }
 0x161   : > { %v842_v59 = vpack.c.bf16 %v807_v57, %v806_v56  ;;  %v1918_v60 = vpop.f32.mrb[60].mxu0 }
 0x162   : > { %v744_v61 = vadd.f32 %v1918_v60, %v2432_v38  ;;  %v735_v62 = vpop.f32.mrb[61].mxu0 }
 0x163   : > { %v736_v63 = vadd.f32 %v2432_v38, %v735_v62  ;;  %v1919_v0 = vpop.f32.mrb[62].mxu0  ;;  %1980 = vmatprep.mubr.msk.bf16.mxu1 %vm869_vm1, %v842_v59 }
 0x164   : > { %v747_v1 = vadd.f32 %v1919_v0, %v2432_v38  ;;  %v738_v2 = vpop.f32.mrb[63].mxu0  ;;  %1981 = vmatmul.mubr.msk.bf16.gmra.mrb[56].mxu1 %vm869_vm1, %v843_v58  ;;  %v812_v4 = vmax.f32 %v744_v61, 0.0 }
 0x165   : > { %v739_v3 = vadd.f32 %v2432_v38, %v738_v2  ;;  %v810_v6 = vmax.f32 %v736_v63, 0.0 }
 0x166   : > { %v813_v5 = vmax.f32 %v747_v1, 0.0 }
 0x167   : > { %v811_v7 = vmax.f32 %v739_v3, 0.0 }
 0x168   : > { %v845_v8 = vpack.c.bf16 %v813_v5, %v812_v4 }
 0x169   : > { %v844_v9 = vpack.c.bf16 %v811_v7, %v810_v6 }
 0x16b   : > { %1984 = vmatprep.mubr.msk.bf16.mxu1 %vm869_vm1, %v844_v9 }
 0x16c   : > { %1985 = vmatmul.mubr.msk.bf16.gmra.mrb[60].mxu1 %vm869_vm1, %v845_v8 }
 0x1c7   : > { %v1926_v11 = vpop.f32.mrb[0].mxu1 }
 0x1c8   : > { %v1009_v12 = vadd.f32 %v1926_v11, %v2533_v10  ;;  %v1000_v13 = vpop.f32.mrb[1].mxu1 }
 0x1c9   : > { %v1001_v38 = vadd.f32 %v2533_v10, %v1000_v13  ;;  %v1927_v14 = vpop.f32.mrb[2].mxu1 }
 0x1ca   : > { %v1257_v15 = vsub.f32 0.0, %v1009_v12  ;;  %v1012_v16 = vadd.f32 %v1927_v14, %v2533_v10  ;;  %v1003_v17 = vpop.f32.mrb[3].mxu1 }
 0x1cb   : > { %v1255_v18 = vsub.f32 0.0, %v1001_v38  ;;  %v1004_v19 = vadd.f32 %v2533_v10, %v1003_v17 }
 0x1cc   : > { %v1323_v20 = vmul.f32 1.442695, %v1257_v15  ;;  %v1258_v21 = vsub.f32 0.0, %v1012_v16 }
 0x1cd   : > { %v1319_v22 = vmul.f32 1.442695, %v1255_v18  ;;  %v1256_v23 = vsub.f32 0.0, %v1004_v19 }
 0x1ce   : > { %2002 = vpow2.f32 %v1323_v20  ;;  %v1325_v24 = vmul.f32 1.442695, %v1258_v21 }
 0x1cf   : > { %2004 = vpow2.f32 %v1319_v22  ;;  %v1321_v25 = vmul.f32 1.442695, %v1256_v23  ;;  %v1930_v26 = vpop.f32.mrb[4].mxu1 }
 0x1d0   : > { %2006 = vpow2.f32 %v1325_v24  ;;  %v1025_v27 = vadd.f32 %v1930_v26, %v2533_v10  ;;  %v1016_v28 = vpop.f32.mrb[5].mxu1 }
 0x1d1   : > { %2008 = vpow2.f32 %v1321_v25  ;;  %v1017_v29 = vadd.f32 %v2533_v10, %v1016_v28  ;;  %v1931_v30 = vpop.f32.mrb[6].mxu1 }
 0x1d2   : > { %v1261_v31 = vsub.f32 0.0, %v1025_v27  ;;  %v1028_v32 = vadd.f32 %v1931_v30, %v2533_v10  ;;  %v1019_v33 = vpop.f32.mrb[7].mxu1 }
 0x1d3   : > { %v1259_v34 = vsub.f32 0.0, %v1017_v29  ;;  %v1020_v35 = vadd.f32 %v2533_v10, %v1019_v33 }
 0x1d4   : > { %v1331_v36 = vmul.f32 1.442695, %v1261_v31  ;;  %v1262_v37 = vsub.f32 0.0, %v1028_v32 }
 0x1d5   : > { %v1327_v39 = vmul.f32 1.442695, %v1259_v34  ;;  %v1260_v40 = vsub.f32 0.0, %v1020_v35 }
 0x1d6   : > { %2010 = vpow2.f32 %v1331_v36  ;;  %v1333_v41 = vmul.f32 1.442695, %v1262_v37 }
 0x1d7   : > { %2012 = vpow2.f32 %v1327_v39  ;;  %v1329_v42 = vmul.f32 1.442695, %v1260_v40  ;;  %v1934_v43 = vpop.f32.mrb[8].mxu1 }
 0x1d8   : > { %v2003_v44 = vpop.eup %2002  ;;  %2014 = vpow2.f32 %v1333_v41  ;;  %v1041_v45 = vadd.f32 %v1934_v43, %v2533_v10  ;;  %v1032_v46 = vpop.f32.mrb[9].mxu1 }
 0x1d9   : > { %v2005_v47 = vpop.eup %2004  ;;  %v1449_v48 = vadd.f32 1.0, %v2003_v44  ;;  %2016 = vpow2.f32 %v1329_v42  ;;  %v1033_v49 = vadd.f32 %v2533_v10, %v1032_v46  ;;  %v1935_v50 = vpop.f32.mrb[10].mxu1 }
 0x1da   : > { %v2007_v51 = vpop.eup %2006  ;;  %v1447_v52 = vadd.f32 1.0, %v2005_v47  ;;  %v1265_v53 = vsub.f32 0.0, %v1041_v45  ;;  %v1044_v54 = vadd.f32 %v1935_v50, %v2533_v10  ;;  %v1035_v55 = vpop.f32.mrb[11].mxu1 }
 0x1db   : > { %v2009_v56 = vpop.eup %2008  ;;  %2018 = vrcp.f32 %v1449_v48  ;;  %v1450_v57 = vadd.f32 1.0, %v2007_v51  ;;  %v1263_v58 = vsub.f32 0.0, %v1033_v49  ;;  %v1036_v59 = vadd.f32 %v2533_v10, %v1035_v55 }
 0x1dc   : > { %2020 = vrcp.f32 %v1447_v52  ;;  %v1448_v60 = vadd.f32 1.0, %v2009_v56  ;;  %v1339_v61 = vmul.f32 1.442695, %v1265_v53  ;;  %v1266_v62 = vsub.f32 0.0, %v1044_v54 }
 0x1dd   : > { %2022 = vrcp.f32 %v1450_v57  ;;  %v1335_v63 = vmul.f32 1.442695, %v1263_v58  ;;  %v1264_v0 = vsub.f32 0.0, %v1036_v59 }
 0x1de   : > { %2024 = vrcp.f32 %v1448_v60  ;;  %v1341_v1 = vmul.f32 1.442695, %v1266_v62 }
 0x1df   : > { %2026 = vpow2.f32 %v1339_v61  ;;  %v1337_v2 = vmul.f32 1.442695, %v1264_v0  ;;  %v1938_v3 = vpop.f32.mrb[12].mxu1 }
 0x1e0   : > { %v2011_v4 = vpop.eup %2010  ;;  %2028 = vpow2.f32 %v1335_v63  ;;  %v1057_v5 = vadd.f32 %v1938_v3, %v2533_v10  ;;  %v1048_v6 = vpop.f32.mrb[13].mxu1 }
 0x1e1   : > { %v2013_v7 = vpop.eup %2012  ;;  %v1453_v8 = vadd.f32 1.0, %v2011_v4  ;;  %2030 = vpow2.f32 %v1341_v1  ;;  %v1049_v9 = vadd.f32 %v2533_v10, %v1048_v6  ;;  %v1939_v11 = vpop.f32.mrb[14].mxu1 }
 0x1e2   : > { %v2015_v12 = vpop.eup %2014  ;;  %v1451_v13 = vadd.f32 1.0, %v2013_v7  ;;  %2032 = vpow2.f32 %v1337_v2  ;;  %v1269_v38 = vsub.f32 0.0, %v1057_v5  ;;  %v1060_v14 = vadd.f32 %v1939_v11, %v2533_v10  ;;  %v1051_v15 = vpop.f32.mrb[15].mxu1 }
 0x1e3   : > { %v2017_v16 = vpop.eup %2016  ;;  %2034 = vrcp.f32 %v1453_v8  ;;  %v1454_v17 = vadd.f32 1.0, %v2015_v12  ;;  %v1267_v18 = vsub.f32 0.0, %v1049_v9  ;;  %v1052_v19 = vadd.f32 %v2533_v10, %v1051_v15 }
 0x1e4   : > { %2036 = vrcp.f32 %v1451_v13  ;;  %v1452_v20 = vadd.f32 1.0, %v2017_v16  ;;  %v1347_v21 = vmul.f32 1.442695, %v1269_v38  ;;  %v1270_v22 = vsub.f32 0.0, %v1060_v14 }
 0x1e5   : > { %v2019_v23 = vpop.eup %2018  ;;  %2038 = vrcp.f32 %v1454_v17  ;;  %v1343_v24 = vmul.f32 1.442695, %v1267_v18  ;;  %v1268_v25 = vsub.f32 0.0, %v1052_v19 }
 0x1e6   : > { %v2021_v26 = vpop.eup %2020  ;;  %1577 = vst.msk [vmem:[%s2555_s19 + $0x10] sm:$0xff] %vm364_vm0, %v2019_v23  ;;  %2040 = vrcp.f32 %v1452_v20  ;;  %v1349_v27 = vmul.f32 1.442695, %v1270_v22 }
 0x1e7   : > { %v2023_v28 = vpop.eup %2022  ;;  %1575 = vst.msk [vmem:[%s2555_s19] sm:$0xff] %vm364_vm0, %v2021_v26  ;;  %2042 = vpow2.f32 %v1347_v21  ;;  %v1345_v29 = vmul.f32 1.442695, %v1268_v25  ;;  %v1942_v30 = vpop.f32.mrb[16].mxu1 }
 0x1e8   : > { %v2025_v31 = vpop.eup %2024  ;;  %1578 = vst.msk [vmem:[%s2555_s19 + $0x18] sm:$0xff] %vm364_vm0, %v2023_v28  ;;  %2044 = vpow2.f32 %v1343_v24  ;;  %v1073_v32 = vadd.f32 %v1942_v30, %v2533_v10  ;;  %v1064_v33 = vpop.f32.mrb[17].mxu1 }
 0x1e9   : > { %v2027_v34 = vpop.eup %2026  ;;  %1576 = vst.msk [vmem:[%s2555_s19 + $0x8] sm:$0xff] %vm364_vm0, %v2025_v31  ;;  %2046 = vpow2.f32 %v1349_v27  ;;  %v1065_v35 = vadd.f32 %v2533_v10, %v1064_v33  ;;  %v1943_v36 = vpop.f32.mrb[18].mxu1 }
 0x1ea   : > { %v2029_v37 = vpop.eup %2028  ;;  %v1457_v39 = vadd.f32 1.0, %v2027_v34  ;;  %2048 = vpow2.f32 %v1345_v29  ;;  %v1273_v40 = vsub.f32 0.0, %v1073_v32  ;;  %v1076_v41 = vadd.f32 %v1943_v36, %v2533_v10  ;;  %v1067_v42 = vpop.f32.mrb[19].mxu1 }
 0x1eb   : > { %v2031_v43 = vpop.eup %2030  ;;  %v1455_v44 = vadd.f32 1.0, %v2029_v37  ;;  %v1271_v45 = vsub.f32 0.0, %v1065_v35  ;;  %v1068_v46 = vadd.f32 %v2533_v10, %v1067_v42 }
 0x1ec   : > { %v2033_v47 = vpop.eup %2032  ;;  %2050 = vrcp.f32 %v1457_v39  ;;  %v1458_v48 = vadd.f32 1.0, %v2031_v43  ;;  %v1355_v49 = vmul.f32 1.442695, %v1273_v40  ;;  %v1274_v50 = vsub.f32 0.0, %v1076_v41 }
 0x1ed   : > { %v2035_v51 = vpop.eup %2034  ;;  %2052 = vrcp.f32 %v1455_v44  ;;  %v1456_v52 = vadd.f32 1.0, %v2033_v47  ;;  %v1351_v53 = vmul.f32 1.442695, %v1271_v45  ;;  %v1272_v54 = vsub.f32 0.0, %v1068_v46 }
 0x1ee   : > { %v2037_v55 = vpop.eup %2036  ;;  %1581 = vst.msk [vmem:[%s2555_s19 + $0x30] sm:$0xff] %vm364_vm0, %v2035_v51  ;;  %2054 = vrcp.f32 %v1458_v48  ;;  %v1357_v56 = vmul.f32 1.442695, %v1274_v50 }
 0x1ef   : > { %v2039_v57 = vpop.eup %2038  ;;  %1579 = vst.msk [vmem:[%s2555_s19 + $0x20] sm:$0xff] %vm364_vm0, %v2037_v55  ;;  %2056 = vrcp.f32 %v1456_v52  ;;  %v1353_v58 = vmul.f32 1.442695, %v1272_v54  ;;  %v1946_v59 = vpop.f32.mrb[20].mxu1 }
 0x1f0   : > { %v2041_v60 = vpop.eup %2040  ;;  %1582 = vst.msk [vmem:[%s2555_s19 + $0x38] sm:$0xff] %vm364_vm0, %v2039_v57  ;;  %2058 = vpow2.f32 %v1355_v49  ;;  %v1089_v61 = vadd.f32 %v1946_v59, %v2533_v10  ;;  %v1080_v62 = vpop.f32.mrb[21].mxu1 }
 0x1f1   : > { %v2043_v63 = vpop.eup %2042  ;;  %1580 = vst.msk [vmem:[%s2555_s19 + $0x28] sm:$0xff] %vm364_vm0, %v2041_v60  ;;  %2060 = vpow2.f32 %v1351_v53  ;;  %v1081_v0 = vadd.f32 %v2533_v10, %v1080_v62  ;;  %v1947_v1 = vpop.f32.mrb[22].mxu1 }
 0x1f2   : > { %v2045_v2 = vpop.eup %2044  ;;  %v1461_v3 = vadd.f32 1.0, %v2043_v63  ;;  %2062 = vpow2.f32 %v1357_v56  ;;  %v1277_v4 = vsub.f32 0.0, %v1089_v61  ;;  %v1092_v5 = vadd.f32 %v1947_v1, %v2533_v10  ;;  %v1083_v6 = vpop.f32.mrb[23].mxu1 }
 0x1f3   : > { %v2047_v7 = vpop.eup %2046  ;;  %v1459_v8 = vadd.f32 1.0, %v2045_v2  ;;  %2064 = vpow2.f32 %v1353_v58  ;;  %v1275_v9 = vsub.f32 0.0, %v1081_v0  ;;  %v1084_v11 = vadd.f32 %v2533_v10, %v1083_v6 }
 0x1f4   : > { %v2049_v12 = vpop.eup %2048  ;;  %2066 = vrcp.f32 %v1461_v3  ;;  %v1462_v13 = vadd.f32 1.0, %v2047_v7  ;;  %v1363_v38 = vmul.f32 1.442695, %v1277_v4  ;;  %v1278_v14 = vsub.f32 0.0, %v1092_v5 }
 0x1f5   : > { %2068 = vrcp.f32 %v1459_v8  ;;  %v1460_v15 = vadd.f32 1.0, %v2049_v12  ;;  %v1359_v16 = vmul.f32 1.442695, %v1275_v9  ;;  %v1276_v17 = vsub.f32 0.0, %v1084_v11 }
 0x1f6   : > { %v2051_v18 = vpop.eup %2050  ;;  %2070 = vrcp.f32 %v1462_v13  ;;  %v1365_v19 = vmul.f32 1.442695, %v1278_v14 }
 0x1f7   : > { %v2053_v20 = vpop.eup %2052  ;;  %1585 = vst.msk [vmem:[%s2555_s19 + $0x50] sm:$0xff] %vm364_vm0, %v2051_v18  ;;  %2072 = vrcp.f32 %v1460_v15  ;;  %v1361_v21 = vmul.f32 1.442695, %v1276_v17  ;;  %v1950_v22 = vpop.f32.mrb[24].mxu1 }
 0x1f8   : > { %v2055_v23 = vpop.eup %2054  ;;  %1583 = vst.msk [vmem:[%s2555_s19 + $0x40] sm:$0xff] %vm364_vm0, %v2053_v20  ;;  %2074 = vpow2.f32 %v1363_v38  ;;  %v1105_v24 = vadd.f32 %v1950_v22, %v2533_v10  ;;  %v1096_v25 = vpop.f32.mrb[25].mxu1 }
 0x1f9   : > { %v2057_v26 = vpop.eup %2056  ;;  %1586 = vst.msk [vmem:[%s2555_s19 + $0x58] sm:$0xff] %vm364_vm0, %v2055_v23  ;;  %2076 = vpow2.f32 %v1359_v16  ;;  %v1097_v27 = vadd.f32 %v2533_v10, %v1096_v25  ;;  %v1951_v28 = vpop.f32.mrb[26].mxu1 }
 0x1fa   : > { %v2059_v29 = vpop.eup %2058  ;;  %1584 = vst.msk [vmem:[%s2555_s19 + $0x48] sm:$0xff] %vm364_vm0, %v2057_v26  ;;  %2078 = vpow2.f32 %v1365_v19  ;;  %v1281_v30 = vsub.f32 0.0, %v1105_v24  ;;  %v1108_v31 = vadd.f32 %v1951_v28, %v2533_v10  ;;  %v1099_v32 = vpop.f32.mrb[27].mxu1 }
 0x1fb   : > { %v2061_v33 = vpop.eup %2060  ;;  %v1465_v34 = vadd.f32 1.0, %v2059_v29  ;;  %2080 = vpow2.f32 %v1361_v21  ;;  %v1279_v35 = vsub.f32 0.0, %v1097_v27  ;;  %v1100_v36 = vadd.f32 %v2533_v10, %v1099_v32 }
 0x1fc   : > { %v2063_v37 = vpop.eup %2062  ;;  %v1463_v39 = vadd.f32 1.0, %v2061_v33  ;;  %v1282_v40 = vsub.f32 0.0, %v1108_v31  ;;  %v1371_v43 = vmul.f32 1.442695, %v1281_v30 }
 0x1fd   : > { %v2065_v41 = vpop.eup %2064  ;;  %2082 = vrcp.f32 %v1465_v34  ;;  %v1466_v42 = vadd.f32 1.0, %v2063_v37  ;;  %v1280_v44 = vsub.f32 0.0, %v1100_v36  ;;  %v1367_v47 = vmul.f32 1.442695, %v1279_v35 }
 0x1fe   : > { %v2067_v45 = vpop.eup %2066  ;;  %2084 = vrcp.f32 %v1463_v39  ;;  %v1464_v46 = vadd.f32 1.0, %v2065_v41  ;;  %v1373_v49 = vmul.f32 1.442695, %v1282_v40 }
 0x1ff   : > { %v2069_v48 = vpop.eup %2068  ;;  %1589 = vst.msk [vmem:[%s2555_s19 + $0x70] sm:$0xff] %vm364_vm0, %v2067_v45  ;;  %2086 = vrcp.f32 %v1466_v42  ;;  %v1954_v50 = vpop.f32.mrb[28].mxu1  ;;  %v1369_v52 = vmul.f32 1.442695, %v1280_v44 }
 0x200   : > { %v2071_v51 = vpop.eup %2070  ;;  %1587 = vst.msk [vmem:[%s2555_s19 + $0x60] sm:$0xff] %vm364_vm0, %v2069_v48  ;;  %2088 = vrcp.f32 %v1464_v46  ;;  %v1121_v53 = vadd.f32 %v1954_v50, %v2533_v10  ;;  %v1112_v54 = vpop.f32.mrb[29].mxu1 }
 0x201   : > { %v2073_v55 = vpop.eup %2072  ;;  %1590 = vst.msk [vmem:[%s2555_s19 + $0x78] sm:$0xff] %vm364_vm0, %v2071_v51  ;;  %2090 = vpow2.f32 %v1371_v43  ;;  %v1113_v56 = vadd.f32 %v2533_v10, %v1112_v54  ;;  %v1955_v57 = vpop.f32.mrb[30].mxu1 }
 0x202   : > { %v2075_v58 = vpop.eup %2074  ;;  %1588 = vst.msk [vmem:[%s2555_s19 + $0x68] sm:$0xff] %vm364_vm0, %v2073_v55  ;;  %2092 = vpow2.f32 %v1367_v47  ;;  %v1285_v59 = vsub.f32 0.0, %v1121_v53  ;;  %v1124_v60 = vadd.f32 %v1955_v57, %v2533_v10  ;;  %v1115_v61 = vpop.f32.mrb[31].mxu1 }
 0x203   : > { %v2077_v62 = vpop.eup %2076  ;;  %v1469_v63 = vadd.f32 1.0, %v2075_v58  ;;  %2094 = vpow2.f32 %v1373_v49  ;;  %v1283_v0 = vsub.f32 0.0, %v1113_v56  ;;  %v1116_v1 = vadd.f32 %v2533_v10, %v1115_v61 }
 0x204   : > { %v2079_v2 = vpop.eup %2078  ;;  %v1467_v3 = vadd.f32 1.0, %v2077_v62  ;;  %2096 = vpow2.f32 %v1369_v52  ;;  %v1286_v4 = vsub.f32 0.0, %v1124_v60  ;;  %v1379_v7 = vmul.f32 1.442695, %v1285_v59 }
 0x205   : > { %v2081_v5 = vpop.eup %2080  ;;  %2098 = vrcp.f32 %v1469_v63  ;;  %v1470_v6 = vadd.f32 1.0, %v2079_v2  ;;  %v1284_v8 = vsub.f32 0.0, %v1116_v1  ;;  %v1375_v11 = vmul.f32 1.442695, %v1283_v0 }
 0x206   : > { %2100 = vrcp.f32 %v1467_v3  ;;  %v1468_v9 = vadd.f32 1.0, %v2081_v5  ;;  %v1381_v13 = vmul.f32 1.442695, %v1286_v4 }
 0x207   : > { %v2083_v12 = vpop.eup %2082  ;;  %2102 = vrcp.f32 %v1470_v6  ;;  %v1958_v38 = vpop.f32.mrb[32].mxu1  ;;  %v1377_v15 = vmul.f32 1.442695, %v1284_v8 }
 0x208   : > { %v2085_v14 = vpop.eup %2084  ;;  %1593 = vst.msk [vmem:[%s2555_s19 + $0x90] sm:$0xff] %vm364_vm0, %v2083_v12  ;;  %2104 = vrcp.f32 %v1468_v9  ;;  %v1137_v16 = vadd.f32 %v1958_v38, %v2533_v10  ;;  %v1128_v17 = vpop.f32.mrb[33].mxu1 }
 0x209   : > { %v2087_v18 = vpop.eup %2086  ;;  %1591 = vst.msk [vmem:[%s2555_s19 + $0x80] sm:$0xff] %vm364_vm0, %v2085_v14  ;;  %2106 = vpow2.f32 %v1379_v7  ;;  %v1129_v19 = vadd.f32 %v2533_v10, %v1128_v17  ;;  %v1959_v20 = vpop.f32.mrb[34].mxu1 }
 0x20a   : > { %v2089_v21 = vpop.eup %2088  ;;  %1594 = vst.msk [vmem:[%s2555_s19 + $0x98] sm:$0xff] %vm364_vm0, %v2087_v18  ;;  %2108 = vpow2.f32 %v1375_v11  ;;  %v1289_v22 = vsub.f32 0.0, %v1137_v16  ;;  %v1140_v23 = vadd.f32 %v1959_v20, %v2533_v10  ;;  %v1131_v24 = vpop.f32.mrb[35].mxu1 }
 0x20b   : > { %v2091_v25 = vpop.eup %2090  ;;  %1592 = vst.msk [vmem:[%s2555_s19 + $0x88] sm:$0xff] %vm364_vm0, %v2089_v21  ;;  %2110 = vpow2.f32 %v1381_v13  ;;  %v1287_v26 = vsub.f32 0.0, %v1129_v19  ;;  %v1132_v27 = vadd.f32 %v2533_v10, %v1131_v24 }
 0x20c   : > { %v2093_v28 = vpop.eup %2092  ;;  %v1473_v29 = vadd.f32 1.0, %v2091_v25  ;;  %2112 = vpow2.f32 %v1377_v15  ;;  %v1290_v30 = vsub.f32 0.0, %v1140_v23  ;;  %v1387_v36 = vmul.f32 1.442695, %v1289_v22 }
 0x20d   : > { %v2095_v31 = vpop.eup %2094  ;;  %v1471_v32 = vadd.f32 1.0, %v2093_v28  ;;  %v1288_v33 = vsub.f32 0.0, %v1132_v27  ;;  %v1383_v40 = vmul.f32 1.442695, %v1287_v26 }
 0x20e   : > { %v2097_v34 = vpop.eup %2096  ;;  %2114 = vrcp.f32 %v1473_v29  ;;  %v1474_v35 = vadd.f32 1.0, %v2095_v31  ;;  %v1389_v43 = vmul.f32 1.442695, %v1290_v30 }
 0x20f   : > { %v2099_v37 = vpop.eup %2098  ;;  %2116 = vrcp.f32 %v1471_v32  ;;  %v1472_v39 = vadd.f32 1.0, %v2097_v34  ;;  %v1962_v41 = vpop.f32.mrb[36].mxu1  ;;  %v1385_v47 = vmul.f32 1.442695, %v1288_v33 }
 0x210   : > { %v2101_v42 = vpop.eup %2100  ;;  %1597 = vst.msk [vmem:[%s2555_s19 + $0xb0] sm:$0xff] %vm364_vm0, %v2099_v37  ;;  %2118 = vrcp.f32 %v1474_v35  ;;  %v1153_v44 = vadd.f32 %v1962_v41, %v2533_v10  ;;  %v1144_v45 = vpop.f32.mrb[37].mxu1 }
 0x211   : > { %v2103_v46 = vpop.eup %2102  ;;  %1595 = vst.msk [vmem:[%s2555_s19 + $0xa0] sm:$0xff] %vm364_vm0, %v2101_v42  ;;  %2120 = vrcp.f32 %v1472_v39  ;;  %v1145_v48 = vadd.f32 %v2533_v10, %v1144_v45  ;;  %v1963_v49 = vpop.f32.mrb[38].mxu1 }
 0x212   : > { %v2105_v50 = vpop.eup %2104  ;;  %1598 = vst.msk [vmem:[%s2555_s19 + $0xb8] sm:$0xff] %vm364_vm0, %v2103_v46  ;;  %2122 = vpow2.f32 %v1387_v36  ;;  %v1293_v51 = vsub.f32 0.0, %v1153_v44  ;;  %v1156_v52 = vadd.f32 %v1963_v49, %v2533_v10  ;;  %v1147_v53 = vpop.f32.mrb[39].mxu1 }
 0x213   : > { %v2107_v54 = vpop.eup %2106  ;;  %1596 = vst.msk [vmem:[%s2555_s19 + $0xa8] sm:$0xff] %vm364_vm0, %v2105_v50  ;;  %2124 = vpow2.f32 %v1383_v40  ;;  %v1291_v55 = vsub.f32 0.0, %v1145_v48  ;;  %v1148_v56 = vadd.f32 %v2533_v10, %v1147_v53 }
 0x214   : > { %v2109_v57 = vpop.eup %2108  ;;  %v1477_v58 = vadd.f32 1.0, %v2107_v54  ;;  %2126 = vpow2.f32 %v1389_v43  ;;  %v1294_v59 = vsub.f32 0.0, %v1156_v52  ;;  %v1395_v1 = vmul.f32 1.442695, %v1293_v51 }
 0x215   : > { %v2111_v60 = vpop.eup %2110  ;;  %v1475_v61 = vadd.f32 1.0, %v2109_v57  ;;  %2128 = vpow2.f32 %v1385_v47  ;;  %v1292_v62 = vsub.f32 0.0, %v1148_v56  ;;  %v1391_v3 = vmul.f32 1.442695, %v1291_v55 }
 0x216   : > { %v2113_v63 = vpop.eup %2112  ;;  %2130 = vrcp.f32 %v1477_v58  ;;  %v1478_v0 = vadd.f32 1.0, %v2111_v60  ;;  %v1397_v6 = vmul.f32 1.442695, %v1294_v59 }
 0x217   : > { %2132 = vrcp.f32 %v1475_v61  ;;  %v1476_v2 = vadd.f32 1.0, %v2113_v63  ;;  %v1966_v4 = vpop.f32.mrb[40].mxu1  ;;  %v1393_v11 = vmul.f32 1.442695, %v1292_v62 }
 0x218   : > { %v2115_v5 = vpop.eup %2114  ;;  %2134 = vrcp.f32 %v1478_v0  ;;  %v1169_v7 = vadd.f32 %v1966_v4, %v2533_v10  ;;  %v1160_v8 = vpop.f32.mrb[41].mxu1 }
 0x219   : > { %v2117_v9 = vpop.eup %2116  ;;  %1601 = vst.msk [vmem:[%s2555_s19 + $0xd0] sm:$0xff] %vm364_vm0, %v2115_v5  ;;  %2136 = vrcp.f32 %v1476_v2  ;;  %v1161_v12 = vadd.f32 %v2533_v10, %v1160_v8  ;;  %v1967_v13 = vpop.f32.mrb[42].mxu1 }
 0x21a   : > { %v2119_v38 = vpop.eup %2118  ;;  %1599 = vst.msk [vmem:[%s2555_s19 + $0xc0] sm:$0xff] %vm364_vm0, %v2117_v9  ;;  %2138 = vpow2.f32 %v1395_v1  ;;  %v1297_v14 = vsub.f32 0.0, %v1169_v7  ;;  %v1172_v15 = vadd.f32 %v1967_v13, %v2533_v10  ;;  %v1163_v16 = vpop.f32.mrb[43].mxu1 }
 0x21b   : > { %v2121_v17 = vpop.eup %2120  ;;  %1602 = vst.msk [vmem:[%s2555_s19 + $0xd8] sm:$0xff] %vm364_vm0, %v2119_v38  ;;  %2140 = vpow2.f32 %v1391_v3  ;;  %v1295_v18 = vsub.f32 0.0, %v1161_v12  ;;  %v1164_v19 = vadd.f32 %v2533_v10, %v1163_v16 }
 0x21c   : > { %v2123_v20 = vpop.eup %2122  ;;  %1600 = vst.msk [vmem:[%s2555_s19 + $0xc8] sm:$0xff] %vm364_vm0, %v2121_v17  ;;  %2142 = vpow2.f32 %v1397_v6  ;;  %v1403_v21 = vmul.f32 1.442695, %v1297_v14  ;;  %v1298_v22 = vsub.f32 0.0, %v1172_v15 }
 0x21d   : > { %v2125_v23 = vpop.eup %2124  ;;  %v1481_v24 = vadd.f32 1.0, %v2123_v20  ;;  %2144 = vpow2.f32 %v1393_v11  ;;  %v1296_v25 = vsub.f32 0.0, %v1164_v19  ;;  %v1399_v30 = vmul.f32 1.442695, %v1295_v18 }
 0x21e   : > { %v2127_v26 = vpop.eup %2126  ;;  %v1479_v27 = vadd.f32 1.0, %v2125_v23  ;;  %2146 = vpow2.f32 %v1403_v21  ;;  %v1405_v34 = vmul.f32 1.442695, %v1298_v22 }
 0x21f   : > { %v2129_v28 = vpop.eup %2128  ;;  %2148 = vrcp.f32 %v1481_v24  ;;  %v1482_v29 = vadd.f32 1.0, %v2127_v26  ;;  %v1970_v31 = vpop.f32.mrb[44].mxu1  ;;  %v1401_v39 = vmul.f32 1.442695, %v1296_v25 }
 0x220   : > { %v2131_v32 = vpop.eup %2130  ;;  %2150 = vrcp.f32 %v1479_v27  ;;  %v1480_v33 = vadd.f32 1.0, %v2129_v28  ;;  %v1185_v35 = vadd.f32 %v1970_v31, %v2533_v10  ;;  %v1176_v36 = vpop.f32.mrb[45].mxu1 }
 0x221   : > { %v2133_v37 = vpop.eup %2132  ;;  %1605 = vst.msk [vmem:[%s2555_s19 + $0xf0] sm:$0xff] %vm364_vm0, %v2131_v32  ;;  %2152 = vrcp.f32 %v1482_v29  ;;  %v1177_v40 = vadd.f32 %v2533_v10, %v1176_v36  ;;  %v1971_v41 = vpop.f32.mrb[46].mxu1 }
 0x222   : > { %v2135_v42 = vpop.eup %2134  ;;  %1603 = vst.msk [vmem:[%s2555_s19 + $0xe0] sm:$0xff] %vm364_vm0, %v2133_v37  ;;  %2154 = vrcp.f32 %v1480_v33  ;;  %v1301_v43 = vsub.f32 0.0, %v1185_v35  ;;  %v1188_v44 = vadd.f32 %v1971_v41, %v2533_v10  ;;  %v1179_v45 = vpop.f32.mrb[47].mxu1 }
 0x223   : > { %v2137_v46 = vpop.eup %2136  ;;  %1606 = vst.msk [vmem:[%s2555_s19 + $0xf8] sm:$0xff] %vm364_vm0, %v2135_v42  ;;  %2156 = vpow2.f32 %v1399_v30  ;;  %v1180_v47 = vadd.f32 %v2533_v10, %v1179_v45  ;;  %v1299_v50 = vsub.f32 0.0, %v1177_v40 }
 0x224   : > { %v2139_v48 = vpop.eup %2138  ;;  %1604 = vst.msk [vmem:[%s2555_s19 + $0xe8] sm:$0xff] %vm364_vm0, %v2137_v46  ;;  %2158 = vpow2.f32 %v1405_v34  ;;  %v1411_v49 = vmul.f32 1.442695, %v1301_v43  ;;  %v1302_v53 = vsub.f32 0.0, %v1188_v44 }
 0x225   : > { %v2141_v51 = vpop.eup %2140  ;;  %v1485_v52 = vadd.f32 1.0, %v2139_v48  ;;  %2160 = vpow2.f32 %v1401_v39  ;;  %v1300_v56 = vsub.f32 0.0, %v1180_v47  ;;  %v1407_v62 = vmul.f32 1.442695, %v1299_v50 }
 0x226   : > { %v2143_v54 = vpop.eup %2142  ;;  %v1483_v55 = vadd.f32 1.0, %v2141_v51  ;;  %2162 = vpow2.f32 %v1411_v49  ;;  %v1413_v3 = vmul.f32 1.442695, %v1302_v53 }
 0x227   : > { %v2145_v57 = vpop.eup %2144  ;;  %2164 = vrcp.f32 %v1485_v52  ;;  %v1486_v58 = vadd.f32 1.0, %v2143_v54  ;;  %v1974_v59 = vpop.f32.mrb[48].mxu1  ;;  %v1409_v7 = vmul.f32 1.442695, %v1300_v56 }
 0x228   : > { %v2147_v60 = vpop.eup %2146  ;;  %2166 = vrcp.f32 %v1483_v55  ;;  %v1484_v61 = vadd.f32 1.0, %v2145_v57  ;;  %v1201_v63 = vadd.f32 %v1974_v59, %v2533_v10  ;;  %v1192_v0 = vpop.f32.mrb[49].mxu1 }
 0x229   : > { %v2149_v1 = vpop.eup %2148  ;;  %2168 = vrcp.f32 %v1486_v58  ;;  %v1489_v2 = vadd.f32 1.0, %v2147_v60  ;;  %v1193_v4 = vadd.f32 %v2533_v10, %v1192_v0  ;;  %v1975_v5 = vpop.f32.mrb[50].mxu1 }
 0x22a   : > { %v2151_v6 = vpop.eup %2150  ;;  %1609 = vst.msk [vmem:[%s2555_s19 + $0x110] sm:$0xff] %vm364_vm0, %v2149_v1  ;;  %2170 = vrcp.f32 %v1484_v61  ;;  %v1305_v8 = vsub.f32 0.0, %v1201_v63  ;;  %v1204_v9 = vadd.f32 %v1975_v5, %v2533_v10  ;;  %v1195_v11 = vpop.f32.mrb[51].mxu1 }
 0x22b   : > { %v2153_v12 = vpop.eup %2152  ;;  %1607 = vst.msk [vmem:[%s2555_s19 + $0x100] sm:$0xff] %vm364_vm0, %v2151_v6  ;;  %2172 = vrcp.f32 %v1489_v2  ;;  %v1196_v13 = vadd.f32 %v2533_v10, %v1195_v11  ;;  %v1303_v15 = vsub.f32 0.0, %v1193_v4  ;;  %v2258_v2 = vld [vmem:[%s2738_s4] ss:$0 sm:$0xff] }
 0x22c   : > { %v2155_v38 = vpop.eup %2154  ;;  %1610 = vst.msk [vmem:[%s2555_s19 + $0x118] sm:$0xff] %vm364_vm0, %v2153_v12  ;;  %2174 = vpow2.f32 %v1407_v62  ;;  %v1419_v14 = vmul.f32 1.442695, %v1305_v8  ;;  %v1306_v17 = vsub.f32 0.0, %v1204_v9 }
 0x22d   : > { %v2157_v16 = vpop.eup %2156  ;;  %1608 = vst.msk [vmem:[%s2555_s19 + $0x108] sm:$0xff] %vm364_vm0, %v2155_v38  ;;  %2176 = vpow2.f32 %v1413_v3  ;;  %v1304_v20 = vsub.f32 0.0, %v1196_v13  ;;  %v1415_v26 = vmul.f32 1.442695, %v1303_v15 }
 0x22e   : > { %v2159_v18 = vpop.eup %2158  ;;  %v1487_v19 = vadd.f32 1.0, %v2157_v16  ;;  %2178 = vpow2.f32 %v1409_v7  ;;  %v1421_v31 = vmul.f32 1.442695, %v1306_v17 }
 0x22f   : > { %v2161_v21 = vpop.eup %2160  ;;  %v1490_v22 = vadd.f32 1.0, %v2159_v18  ;;  %2180 = vpow2.f32 %v1419_v14  ;;  %v1978_v23 = vpop.f32.mrb[52].mxu1  ;;  %v1417_v35 = vmul.f32 1.442695, %v1304_v20 }
 0x230   : > { %v2163_v24 = vpop.eup %2162  ;;  %2182 = vrcp.f32 %v1487_v19  ;;  %v1488_v25 = vadd.f32 1.0, %v2161_v21  ;;  %v1217_v27 = vadd.f32 %v1978_v23, %v2533_v10  ;;  %v1208_v28 = vpop.f32.mrb[53].mxu1 }
 0x231   : > { %v2165_v29 = vpop.eup %2164  ;;  %2184 = vrcp.f32 %v1490_v22  ;;  %v1493_v30 = vadd.f32 1.0, %v2163_v24  ;;  %v1209_v32 = vadd.f32 %v2533_v10, %v1208_v28  ;;  %v1979_v33 = vpop.f32.mrb[54].mxu1 }
 0x232   : > { %v2167_v34 = vpop.eup %2166  ;;  %1613 = vst.msk [vmem:[%s2555_s19 + $0x130] sm:$0xff] %vm364_vm0, %v2165_v29  ;;  %2186 = vrcp.f32 %v1488_v25  ;;  %v1309_v36 = vsub.f32 0.0, %v1217_v27  ;;  %v1220_v37 = vadd.f32 %v1979_v33, %v2533_v10  ;;  %v1211_v39 = vpop.f32.mrb[55].mxu1 }
 0x233   : > { %v2169_v40 = vpop.eup %2168  ;;  %1611 = vst.msk [vmem:[%s2555_s19 + $0x120] sm:$0xff] %vm364_vm0, %v2167_v34  ;;  %2188 = vrcp.f32 %v1493_v30  ;;  %v1307_v41 = vsub.f32 0.0, %v1209_v32  ;;  %v1212_v42 = vadd.f32 %v2533_v10, %v1211_v39 }
 0x234   : > { %v2171_v43 = vpop.eup %2170  ;;  %1614 = vst.msk [vmem:[%s2555_s19 + $0x138] sm:$0xff] %vm364_vm0, %v2169_v40  ;;  %2190 = vpow2.f32 %v1415_v26  ;;  %v1427_v44 = vmul.f32 1.442695, %v1309_v36  ;;  %v1310_v45 = vsub.f32 0.0, %v1220_v37 }
 0x235   : > { %v2173_v46 = vpop.eup %2172  ;;  %1612 = vst.msk [vmem:[%s2555_s19 + $0x128] sm:$0xff] %vm364_vm0, %v2171_v43  ;;  %2192 = vpow2.f32 %v1421_v31  ;;  %v1423_v47 = vmul.f32 1.442695, %v1307_v41  ;;  %v1308_v48 = vsub.f32 0.0, %v1212_v42 }
 0x236   : > { %v2175_v49 = vpop.eup %2174  ;;  %1617 = vst.msk [vmem:[%s2555_s19 + $0x150] sm:$0xff] %vm364_vm0, %v2173_v46  ;;  %2194 = vpow2.f32 %v1417_v35  ;;  %v1429_v55 = vmul.f32 1.442695, %v1310_v45 }
 0x237   : > { %v2177_v50 = vpop.eup %2176  ;;  %v1491_v51 = vadd.f32 1.0, %v2175_v49  ;;  %2196 = vpow2.f32 %v1427_v44  ;;  %v1982_v52 = vpop.f32.mrb[56].mxu1  ;;  %v1425_v60 = vmul.f32 1.442695, %v1308_v48 }
 0x238   : > { %v2179_v53 = vpop.eup %2178  ;;  %v1494_v54 = vadd.f32 1.0, %v2177_v50  ;;  %2198 = vpow2.f32 %v1423_v47  ;;  %v1233_v56 = vadd.f32 %v1982_v52, %v2533_v10  ;;  %v1224_v57 = vpop.f32.mrb[57].mxu1 }
 0x239   : > { %v2181_v58 = vpop.eup %2180  ;;  %2200 = vrcp.f32 %v1491_v51  ;;  %v1492_v59 = vadd.f32 1.0, %v2179_v53  ;;  %v1225_v61 = vadd.f32 %v2533_v10, %v1224_v57  ;;  %v1983_v62 = vpop.f32.mrb[58].mxu1 }
 0x23a   : > { %v2183_v63 = vpop.eup %2182  ;;  %2202 = vrcp.f32 %v1494_v54  ;;  %v1497_v0 = vadd.f32 1.0, %v2181_v58  ;;  %v1313_v1 = vsub.f32 0.0, %v1233_v56  ;;  %v1236_v3 = vadd.f32 %v2258_v2, %v1983_v62  ;;  %v1227_v4 = vpop.f32.mrb[59].mxu1 }
 0x23b   : > { %v2185_v5 = vpop.eup %2184  ;;  %1615 = vst.msk [vmem:[%s2555_s19 + $0x140] sm:$0xff] %vm364_vm0, %v2183_v63  ;;  %2204 = vrcp.f32 %v1492_v59  ;;  %v1311_v6 = vsub.f32 0.0, %v1225_v61  ;;  %v1228_v7 = vadd.f32 %v2258_v2, %v1227_v4 }
 0x23c   : > { %v2187_v10 = vpop.eup %2186  ;;  %1618 = vst.msk [vmem:[%s2555_s19 + $0x158] sm:$0xff] %vm364_vm0, %v2185_v5  ;;  %2206 = vrcp.f32 %v1497_v0  ;;  %v1435_v8 = vmul.f32 1.442695, %v1313_v1  ;;  %v1314_v9 = vsub.f32 0.0, %v1236_v3 }
 0x23d   : > { %v2189_v11 = vpop.eup %2188  ;;  %1616 = vst.msk [vmem:[%s2555_s19 + $0x148] sm:$0xff] %vm364_vm0, %v2187_v10  ;;  %2208 = vpow2.f32 %v1429_v55  ;;  %v1431_v12 = vmul.f32 1.442695, %v1311_v6  ;;  %v1312_v13 = vsub.f32 0.0, %v1228_v7 }
 0x23e   : > { %v2191_v38 = vpop.eup %2190  ;;  %1621 = vst.msk [vmem:[%s2555_s19 + $0x170] sm:$0xff] %vm364_vm0, %v2189_v11  ;;  %2210 = vpow2.f32 %v1425_v60  ;;  %v1437_v19 = vmul.f32 1.442695, %v1314_v9 }
 0x23f   : > { %v2193_v14 = vpop.eup %2192  ;;  %v1495_v15 = vadd.f32 1.0, %v2191_v38  ;;  %2212 = vpow2.f32 %v1435_v8  ;;  %v1986_v16 = vpop.f32.mrb[60].mxu1  ;;  %v1433_v24 = vmul.f32 1.442695, %v1312_v13 }
 0x240   : > { %v2195_v17 = vpop.eup %2194  ;;  %v1498_v18 = vadd.f32 1.0, %v2193_v14  ;;  %2214 = vpow2.f32 %v1431_v12  ;;  %v1249_v20 = vadd.f32 %v2258_v2, %v1986_v16  ;;  %v1240_v21 = vpop.f32.mrb[61].mxu1 }
 0x241   : > { %v2197_v22 = vpop.eup %2196  ;;  %2216 = vrcp.f32 %v1495_v15  ;;  %v1496_v23 = vadd.f32 1.0, %v2195_v17  ;;  %v1241_v25 = vadd.f32 %v2258_v2, %v1240_v21  ;;  %v1987_v26 = vpop.f32.mrb[62].mxu1 }
 0x242   : > { %v2199_v27 = vpop.eup %2198  ;;  %2218 = vrcp.f32 %v1498_v18  ;;  %v1501_v28 = vadd.f32 1.0, %v2197_v22  ;;  %v1317_v29 = vsub.f32 0.0, %v1249_v20  ;;  %v1252_v30 = vadd.f32 %v2258_v2, %v1987_v26  ;;  %v1243_v31 = vpop.f32.mrb[63].mxu1 }
 0x243   : > { %v2201_v32 = vpop.eup %2200  ;;  %2220 = vrcp.f32 %v1496_v23  ;;  %v1499_v33 = vadd.f32 1.0, %v2199_v27  ;;  %v1315_v34 = vsub.f32 0.0, %v1241_v25  ;;  %v1244_v35 = vadd.f32 %v2258_v2, %v1243_v31 }
 0x244   : > { %v2203_v36 = vpop.eup %2202  ;;  %1619 = vst.msk [vmem:[%s2555_s19 + $0x160] sm:$0xff] %vm364_vm0, %v2201_v32  ;;  %2222 = vrcp.f32 %v1501_v28  ;;  %v1443_v37 = vmul.f32 1.442695, %v1317_v29  ;;  %v1318_v42 = vsub.f32 0.0, %v1252_v30 }
 0x245   : > { %v2205_v39 = vpop.eup %2204  ;;  %1622 = vst.msk [vmem:[%s2555_s19 + $0x178] sm:$0xff] %vm364_vm0, %v2203_v36  ;;  %2224 = vrcp.f32 %v1499_v33  ;;  %v1439_v40 = vmul.f32 1.442695, %v1315_v34  ;;  %v1316_v44 = vsub.f32 0.0, %v1244_v35 }
 0x246   : > { %v2207_v41 = vpop.eup %2206  ;;  %1620 = vst.msk [vmem:[%s2555_s19 + $0x168] sm:$0xff] %vm364_vm0, %v2205_v39  ;;  %2226 = vpow2.f32 %v1437_v19  ;;  %v1445_v51 = vmul.f32 1.442695, %v1318_v42 }
 0x247   : > { %v2209_v43 = vpop.eup %2208  ;;  %1625 = vst.msk [vmem:[%s2555_s19 + $0x190] sm:$0xff] %vm364_vm0, %v2207_v41  ;;  %2228 = vpow2.f32 %v1433_v24  ;;  %v1441_v54 = vmul.f32 1.442695, %v1316_v44 }
 0x248   : > { %v2211_v45 = vpop.eup %2210  ;;  %v1502_v46 = vadd.f32 1.0, %v2209_v43  ;;  %2230 = vpow2.f32 %v1443_v37 }
 0x249   : > { %v2213_v47 = vpop.eup %2212  ;;  %v1500_v48 = vadd.f32 1.0, %v2211_v45  ;;  %2232 = vpow2.f32 %v1439_v40 }
 0x24a   : > { %v2215_v49 = vpop.eup %2214  ;;  %2234 = vrcp.f32 %v1502_v46  ;;  %v1505_v50 = vadd.f32 1.0, %v2213_v47 }
 0x24b   : > { %v2217_v52 = vpop.eup %2216  ;;  %2236 = vrcp.f32 %v1500_v48  ;;  %v1503_v53 = vadd.f32 1.0, %v2215_v49 }
 0x24c   : > { %v2219_v55 = vpop.eup %2218  ;;  %1623 = vst.msk [vmem:[%s2555_s19 + $0x180] sm:$0xff] %vm364_vm0, %v2217_v52  ;;  %2238 = vrcp.f32 %v1505_v50 }
 0x24d   : > { %v2221_v56 = vpop.eup %2220  ;;  %1626 = vst.msk [vmem:[%s2555_s19 + $0x198] sm:$0xff] %vm364_vm0, %v2219_v55  ;;  %2240 = vrcp.f32 %v1503_v53 }
 0x24e   : > { %v2223_v57 = vpop.eup %2222  ;;  %1624 = vst.msk [vmem:[%s2555_s19 + $0x188] sm:$0xff] %vm364_vm0, %v2221_v56  ;;  %2242 = vpow2.f32 %v1445_v51 }
 0x24f   : > { %v2225_v58 = vpop.eup %2224  ;;  %1629 = vst.msk [vmem:[%s2555_s19 + $0x1b0] sm:$0xff] %vm364_vm0, %v2223_v57  ;;  %2244 = vpow2.f32 %v1441_v54 }
 0x250   : > { %v2227_v59 = vpop.eup %2226  ;;  %1627 = vst.msk [vmem:[%s2555_s19 + $0x1a0] sm:$0xff] %vm364_vm0, %v2225_v58 }
 0x251   : > { %v2229_v60 = vpop.eup %2228  ;;  %v1506_v61 = vadd.f32 1.0, %v2227_v59 }
 0x252   : > { %v2231_v62 = vpop.eup %2230  ;;  %v1504_v63 = vadd.f32 1.0, %v2229_v60 }
 0x253   : > { %v2233_v0 = vpop.eup %2232  ;;  %2246 = vrcp.f32 %v1506_v61  ;;  %v1509_v1 = vadd.f32 1.0, %v2231_v62 }
 0x254   : > { %v2235_v2 = vpop.eup %2234  ;;  %2248 = vrcp.f32 %v1504_v63  ;;  %v1507_v3 = vadd.f32 1.0, %v2233_v0 }
 0x255   : > { %v2237_v4 = vpop.eup %2236  ;;  %1630 = vst.msk [vmem:[%s2555_s19 + $0x1b8] sm:$0xff] %vm364_vm0, %v2235_v2  ;;  %2250 = vrcp.f32 %v1509_v1 }
 0x256   : > { %v2239_v5 = vpop.eup %2238  ;;  %1628 = vst.msk [vmem:[%s2555_s19 + $0x1a8] sm:$0xff] %vm364_vm0, %v2237_v4  ;;  %2252 = vrcp.f32 %v1507_v3 }
 0x257   : > { %v2241_v6 = vpop.eup %2240  ;;  %1633 = vst.msk [vmem:[%s2555_s19 + $0x1d0] sm:$0xff] %vm364_vm0, %v2239_v5 }
 0x258   : > { %v2243_v7 = vpop.eup %2242  ;;  %1631 = vst.msk [vmem:[%s2555_s19 + $0x1c0] sm:$0xff] %vm364_vm0, %v2241_v6 }
 0x259   : > { %v2245_v10 = vpop.eup %2244  ;;  %v1510_v8 = vadd.f32 1.0, %v2243_v7 }
 0x25a   : > { %v1508_v9 = vadd.f32 1.0, %v2245_v10 }
 0x25b   : > { %2254 = vrcp.f32 %v1510_v8 }
 0x25c   : > { %2256 = vrcp.f32 %v1508_v9 }
 0x25d   : > { %v2247_v11 = vpop.eup %2246 }
 0x25e   : > { %v2249_v12 = vpop.eup %2248  ;;  %1634 = vst.msk [vmem:[%s2555_s19 + $0x1d8] sm:$0xff] %vm364_vm0, %v2247_v11 }
 0x25f   : > { %v2251_v13 = vpop.eup %2250  ;;  %1632 = vst.msk [vmem:[%s2555_s19 + $0x1c8] sm:$0xff] %vm364_vm0, %v2249_v12 }
 0x260   : > { %v2253_v38 = vpop.eup %2252  ;;  %1637 = vst.msk [vmem:[%s2555_s19 + $0x1f0] sm:$0xff] %vm364_vm0, %v2251_v13 }
 0x261   : > { %1635 = vst.msk [vmem:[%s2555_s19 + $0x1e0] sm:$0xff] %vm364_vm0, %v2253_v38 }
 0x265   : > { %v2255_v14 = vpop.eup %2254 }
 0x266   : > { %v2257_v15 = vpop.eup %2256  ;;  %1638 = vst.msk [vmem:[%s2555_s19 + $0x1f8] sm:$0xff] %vm364_vm0, %v2255_v14 }
 0x267   : > { %1636 = vst.msk [vmem:[%s2555_s19 + $0x1e8] sm:$0xff] %vm364_vm0, %v2257_v15 }
 0x268 PF: > { %s15_s18 = sadd.s32 1, %s2265_s18  }
 0x269   : > { %p12_p4 = scmp.ge.s32.totalorder %s15_s18, 4  }
 0x26b   :  { %14 = sbr.rel (!%p12_p4) target bundleno = 1 (0x1), region = 70 }

</bundles_post_ra>
